<compile_context>
chip_gen: v6e
topology: v6e:2x2x1
jax: 0.10.0
libtpu: 0.0.40
codegen_flags: <defaults>
</compile_context>

<pallas_src>
import functools
import jax
import jax.numpy as jnp
from jax.experimental import pallas as pl
from jax.experimental.pallas import tpu as pltpu

# ----------------- model config (small, consistent with the module) -----------------
D_MODEL = 32
D_INNER = 64
N_HEAD = 4
D_K = 8
D_V = 8
REPEATS = 2
HIDDEN_DIMS_OUTPUT = [32, 16]
# mainnet_config entries: (name, dim1, dim2); forward() uses layer[1], layer[2]
MAINNET_CONFIG = [("linear", 8, 16), ("linear", 16, 8)]
VOCAB = 22       # nn.Embedding(22, d_model)
MAX_POS = 16     # nn.Embedding(16, d_model)
LN_EPS = 1e-6

NEG_INF = -1e30
_TRANS_B = (((1,), (1,)), ((), ()))       # A @ B.T without an explicit transpose


# ------------------------------- helpers --------------------------------------------
def _layer_norm(x, gamma, beta, eps=LN_EPS):
    # variance via E[x^2] - mean^2: one reduction pass instead of two.
    mean = jnp.mean(x, axis=-1, keepdims=True)
    msq = jnp.mean(x * x, axis=-1, keepdims=True)
    var = msq - mean * mean
    return (x - mean) * jax.lax.rsqrt(var + eps) * gamma + beta


# --------------------------- fused HyperBERT forward kernel --------------------------
def fused_forward_kernel(
        x_ref, mask_ref, sel_ref,
        wqkv_ref, wo_ref, ln1g_ref, ln1b_ref,
        w1_ref, b1_ref, w2_ref, b2_ref, ln2g_ref, ln2b_ref,
        hw1_ref, hb1_ref, hw2_ref, hb2_ref, hw3_ref, hb3_ref,
        head_ref, cls_ref, attn_ref=None,
        *, batch, seq_len, return_attention):
    """Both AttentionBlocks + all hypernet heads in one invocation (no grid).

    x_ref: (B*L, D). mask_ref: (B*L, B*L) additive block-diagonal batch mask.
    sel_ref: (B, B*L) one-hot selector of the per-batch [CLS] rows.
    """
    x = x_ref[...]                        # (B*L, D) f32, lives in vregs/VMEM throughout
    mask = mask_ref[...]                  # 0 within a batch element, -1e30 across
    scale = 1.0 / (D_K ** 0.5)
    q_off, k_off, v_off = 0, N_HEAD * D_K, 2 * N_HEAD * D_K

    for r in range(REPEATS):              # static: both AttentionBlocks fused
        # ---- multi-head self-attention sublayer (residual + post-LayerNorm) ----
        # fused Q|K|V projection: one MXU push for the whole batch.
        qkv = jnp.dot(x, wqkv_ref[r], preferred_element_type=jnp.float32)   # (B*L, 3*H*dk)
        wo = wo_ref[r]                                                      # (H*dv, D)
        o = None
        for h in range(N_HEAD):           # static head loop; batch folded via block mask
            q_h = qkv[:, q_off + h * D_K:q_off + (h + 1) * D_K]
            k_h = qkv[:, k_off + h * D_K:k_off + (h + 1) * D_K]
            v_h = qkv[:, v_off + h * D_V:v_off + (h + 1) * D_V]
            s = jax.lax.dot_general(q_h, k_h, _TRANS_B,
                                    preferred_element_type=jnp.float32) * scale + mask
            s = s - jnp.max(s, axis=-1, keepdims=True)
            p = jnp.exp(s)
            p = p * pl.reciprocal(jnp.sum(p, axis=-1, keepdims=True), approx=True)
            if return_attention and r == REPEATS - 1:
                # debug path only (default builds skip it entirely, per perf review)
                for b in range(batch):
                    attn_ref[b, h] = p[b * seq_len:(b + 1) * seq_len,
                                       b * seq_len:(b + 1) * seq_len]
            ctx = jnp.dot(p, v_h, preferred_element_type=jnp.float32)        # (B*L, dv)
            # accumulate through the matching W_o rows instead of a lane concatenate
            contrib = jnp.dot(ctx, wo[h * D_V:(h + 1) * D_V, :],
                              preferred_element_type=jnp.float32)            # (B*L, D)
            o = contrib if o is None else o + contrib
        x = _layer_norm(o + x, ln1g_ref[r], ln1b_ref[r])

        # ---- position-wise FFN sublayer (residual + post-LayerNorm) ----
        h1 = jnp.maximum(jnp.dot(x, w1_ref[r], preferred_element_type=jnp.float32)
                         + b1_ref[r], 0.0)
        h2 = jnp.dot(h1, w2_ref[r], preferred_element_type=jnp.float32) + b2_ref[r]
        x = _layer_norm(h2 + x, ln2g_ref[r], ln2b_ref[r])

    # ---- [CLS] rows -> all hypernet heads as three block-diagonal-packed matmuls ----
    cls = jnp.dot(sel_ref[...], x, preferred_element_type=jnp.float32)       # (B, D)
    g1 = jnp.maximum(jnp.dot(cls, hw1_ref[...], preferred_element_type=jnp.float32)
                     + hb1_ref[...], 0.0)                                    # (B, 8*32)
    g2 = jnp.maximum(jnp.dot(g1, hw2_ref[...], preferred_element_type=jnp.float32)
                     + hb2_ref[...], 0.0)                                    # (B, 8*16)
    g3 = jnp.dot(g2, hw3_ref[...], preferred_element_type=jnp.float32) + hb3_ref[...]
    head_ref[...] = g3                    # single lane-dense (B, 384) store
    cls_ref[...] = cls


def _fused_call(x2d, mask, sel, packed, batch, seq_len, return_attention):
    out_shapes = [
        jax.ShapeDtypeStruct((batch, packed["head_pad"]), jnp.float32),
        jax.ShapeDtypeStruct((batch, D_MODEL), jnp.float32),
    ]
    if return_attention:
        out_shapes.append(
            jax.ShapeDtypeStruct((batch, N_HEAD, seq_len, seq_len), jnp.float32))
    kernel = functools.partial(fused_forward_kernel, batch=batch, seq_len=seq_len,
                               return_attention=return_attention)
    return pl.pallas_call(
        kernel,
        out_shape=tuple(out_shapes),
        compiler_params=pltpu.CompilerParams(vmem_limit_bytes=16 * 1024 * 1024),
    )(x2d, mask, sel,
      packed["wqkv"], packed["wo"], packed["ln1_g"], packed["ln1_b"],
      packed["ffn_w1"], packed["ffn_b1"], packed["ffn_w2"], packed["ffn_b2"],
      packed["ln2_g"], packed["ln2_b"],
      packed["hw1"], packed["hb1"], packed["hw2"], packed["hb2"],
      packed["hw3"], packed["hb3"])


# ------------------------------ parameter construction -------------------------------
def _linear(key, d_in, d_out, bias=True):
    kw, kb = jax.random.split(key)
    bound = 1.0 / (d_in ** 0.5)
    w = jax.random.uniform(kw, (d_in, d_out), jnp.float32, -bound, bound)
    b = (jax.random.uniform(kb, (1, d_out), jnp.float32, -bound, bound)
         if bias else None)
    return w, b


def init_block(key):
    ks = jax.random.split(key, 8)
    wq, _ = _linear(ks[0], D_MODEL, N_HEAD * D_K, bias=False)
    wk, _ = _linear(ks[1], D_MODEL, N_HEAD * D_K, bias=False)
    wv, _ = _linear(ks[2], D_MODEL, N_HEAD * D_V, bias=False)
    wo, _ = _linear(ks[3], N_HEAD * D_V, D_MODEL, bias=False)
    w1, b1 = _linear(ks[4], D_MODEL, D_INNER)
    w2, b2 = _linear(ks[5], D_INNER, D_MODEL)
    return dict(
        wq=wq, wk=wk, wv=wv, wo=wo,
        ln1_g=jnp.ones((1, D_MODEL), jnp.float32),
        ln1_b=jnp.zeros((1, D_MODEL), jnp.float32),
        ffn_w1=w1, ffn_b1=b1, ffn_w2=w2, ffn_b2=b2,
        ln2_g=jnp.ones((1, D_MODEL), jnp.float32),
        ln2_b=jnp.zeros((1, D_MODEL), jnp.float32),
    )


def init_head(key, out_dim):
    dims = [D_MODEL] + list(HIDDEN_DIMS_OUTPUT)
    ks = jax.random.split(key, len(dims))
    layers = []
    for i in range(len(dims) - 1):
        layers.append(_linear(ks[i], dims[i], dims[i + 1]))
    layers.append(_linear(ks[-1], dims[-1], out_dim))   # HyperLinear final projection
    return layers


def _pack_heads(head_list):
    """Pack all hypernet heads into three (block-diagonal) matmuls + one output slab."""
    h1_dim, h2_dim = HIDDEN_DIMS_OUTPUT
    n = len(head_list)
    out_dims = [layers[-1][0].shape[1] for layers in head_list]
    offsets = [0]
    for d in out_dims:
        offsets.append(offsets[-1] + d)
    total = offsets[-1]
    total_pad = ((total + 127) // 128) * 128            # lane-dense output slab width

    hw1 = jnp.concatenate([layers[0][0] for layers in head_list], axis=1)   # (D, n*h1)
    hb1 = jnp.concatenate([layers[0][1] for layers in head_list], axis=1)
    hb2 = jnp.concatenate([layers[1][1] for layers in head_list], axis=1)
    hw2 = jnp.zeros((n * h1_dim, n * h2_dim), jnp.float32)
    hw3 = jnp.zeros((n * h2_dim, total_pad), jnp.float32)
    hb3 = jnp.zeros((1, total_pad), jnp.float32)
    for j, layers in enumerate(head_list):
        hw2 = hw2.at[j * h1_dim:(j + 1) * h1_dim, j * h2_dim:(j + 1) * h2_dim].set(layers[1][0])
        hw3 = hw3.at[j * h2_dim:(j + 1) * h2_dim, offsets[j]:offsets[j + 1]].set(layers[2][0])
        hb3 = hb3.at[:, offsets[j]:offsets[j + 1]].set(layers[2][1])
    return dict(hw1=hw1, hb1=hb1, hw2=hw2, hb2=hb2, hw3=hw3, hb3=hb3,
                offsets=offsets, head_total=total, head_pad=total_pad)


def pack_params(params):
    blocks = params["blocks"]
    packed = dict(
        wqkv=jnp.stack([jnp.concatenate([b["wq"], b["wk"], b["wv"]], axis=1)
                        for b in blocks]),                       # (R, D, 3*H*dk)
        wo=jnp.stack([b["wo"] for b in blocks]),                 # (R, H*dv, D)
        ln1_g=jnp.stack([b["ln1_g"] for b in blocks]),
        ln1_b=jnp.stack([b["ln1_b"] for b in blocks]),
        ffn_w1=jnp.stack([b["ffn_w1"] for b in blocks]),
        ffn_b1=jnp.stack([b["ffn_b1"] for b in blocks]),
        ffn_w2=jnp.stack([b["ffn_w2"] for b in blocks]),
        ffn_b2=jnp.stack([b["ffn_b2"] for b in blocks]),
        ln2_g=jnp.stack([b["ln2_g"] for b in blocks]),
        ln2_b=jnp.stack([b["ln2_b"] for b in blocks]),
    )
    head_list = []
    for i in range(len(MAINNET_CONFIG)):
        head_list += [params["w_x"][i], params["b_x"][i],
                      params["w_t"][i], params["w_b_t"][i]]
    packed.update(_pack_heads(head_list))
    return packed


def init_hyperbert(key):
    k_emb, k_pos, k_blk, k_heads = jax.random.split(key, 4)
    params = dict(
        embedding=jax.random.normal(k_emb, (VOCAB, D_MODEL), jnp.float32) * 0.02,
        pos_embedding=jax.random.normal(k_pos, (MAX_POS, D_MODEL), jnp.float32) * 0.02,
        blocks=[init_block(k) for k in jax.random.split(k_blk, REPEATS)],
        w_x=[], b_x=[], w_t=[], w_b_t=[],
    )
    hk = jax.random.split(k_heads, 4 * len(MAINNET_CONFIG))
    for i, layer in enumerate(MAINNET_CONFIG):
        d1, d2 = layer[1], layer[2]
        params["w_x"].append(init_head(hk[4 * i + 0], d1 * d2))   # weight head
        params["b_x"].append(init_head(hk[4 * i + 1], d2))        # bias head
        params["w_t"].append(init_head(hk[4 * i + 2], 1 * d2))    # time-weight head
        params["w_b_t"].append(init_head(hk[4 * i + 3], 1 * d2))  # time-bias head
    params["packed"] = pack_params(params)
    return params


# --------------------------------- HyperBERT forward --------------------------------
def process_tensors(tokens):
    cls_token = jnp.full_like(tokens[..., :1], 21)
    seq = jnp.concatenate([cls_token, tokens], axis=-1)
    positions = jnp.arange(seq.shape[1], dtype=jnp.int32)[None, :]
    return seq, positions


def hyperbert_forward(params, seq_tokens, positions, return_embedding=False,
                      return_attention=False):
    # embedding + positional embedding: plain-JAX gather (glue)
    x = params["embedding"][seq_tokens] + params["pos_embedding"][positions]  # (B,L,D)
    B, L, D = x.shape
    x2d = x.reshape(B * L, D)

    # additive block-diagonal mask folds the whole batch into one attention matmul/head
    row = jnp.arange(B * L, dtype=jnp.int32) // L
    mask = jnp.where(row[:, None] == row[None, :], 0.0, NEG_INF).astype(jnp.float32)
    # one-hot selector of the per-batch [CLS] rows (row b*L)
    sel = (jnp.arange(B * L, dtype=jnp.int32)[None, :]
           == (jnp.arange(B, dtype=jnp.int32) * L)[:, None]).astype(jnp.float32)

    packed = params["packed"]
    outs = _fused_call(x2d, mask, sel, packed, B, L, return_attention)
    head_out, cls_emb = outs[0], outs[1]

    off = packed["offsets"]
    w_x, b_x, w_t, w_b_t = [], [], [], []
    for i, layer in enumerate(MAINNET_CONFIG):
        d1, d2 = layer[1], layer[2]
        j = 4 * i
        w_x.append(head_out[:, off[j]:off[j + 1]].reshape(B, d1, d2))
        b_x.append(head_out[:, off[j + 1]:off[j + 2]].reshape(B, d2))
        w_t.append(head_out[:, off[j + 2]:off[j + 3]].reshape(B, 1, d2))
        w_b_t.append(head_out[:, off[j + 3]:off[j + 4]].reshape(B, 1, d2))

    results = [w_x, b_x, w_t, w_b_t]
    if return_embedding:
        results.append(cls_emb)
    if return_attention:
        results.append(outs[2])
    return tuple(results)


# -------------------------------------- main -----------------------------------------
if __name__ == "__main__":
    key = jax.random.PRNGKey(0)
    k_params, k_tokens = jax.random.split(key)

    params = init_hyperbert(k_params)

    batch, seq_len = 2, 7                       # +1 CLS token -> L = 8 (< MAX_POS)
    tokens = jax.random.randint(k_tokens, (batch, seq_len), 0, 21, dtype=jnp.int32)
    seq, positions = process_tensors(tokens)

    w_x, b_x, w_t, w_b_t = hyperbert_forward(params, seq, positions)
    jax.block_until_ready((w_x, b_x, w_t, w_b_t))

    # sanity on shapes implied by the PyTorch module
    assert w_x[0].shape == (batch, MAINNET_CONFIG[0][1], MAINNET_CONFIG[0][2])
    assert b_x[0].shape == (batch, MAINNET_CONFIG[0][2])
    assert w_t[1].shape == (batch, 1, MAINNET_CONFIG[1][2])
    assert w_b_t[1].shape == (batch, 1, MAINNET_CONFIG[1][2])

    # AttentionBlock semantics: self-attention maps are available on demand
    *_, attn = hyperbert_forward(params, seq, positions, return_attention=True)
    jax.block_until_ready(attn)
    L = seq.shape[1]
    assert attn.shape == (batch, N_HEAD, L, L)
    assert bool(jnp.all(jnp.abs(jnp.sum(attn, axis=-1) - 1.0) < 1e-2))

    print("KERNEL_OK")
</pallas_src>

<mosaic_0001>
module attributes {stable_mosaic.version = 11 : i64} {
  func.func @fused_forward_kernel(%arg0: memref<16x32xf32, #tpu.memory_space<vmem>>, %arg1: memref<16x16xf32, #tpu.memory_space<vmem>>, %arg2: memref<2x16xf32, #tpu.memory_space<vmem>>, %arg3: memref<2x32x96xf32, #tpu.memory_space<vmem>>, %arg4: memref<2x32x32xf32, #tpu.memory_space<vmem>>, %arg5: memref<2x1x32xf32, #tpu.memory_space<vmem>>, %arg6: memref<2x1x32xf32, #tpu.memory_space<vmem>>, %arg7: memref<2x32x64xf32, #tpu.memory_space<vmem>>, %arg8: memref<2x1x64xf32, #tpu.memory_space<vmem>>, %arg9: memref<2x64x32xf32, #tpu.memory_space<vmem>>, %arg10: memref<2x1x32xf32, #tpu.memory_space<vmem>>, %arg11: memref<2x1x32xf32, #tpu.memory_space<vmem>>, %arg12: memref<2x1x32xf32, #tpu.memory_space<vmem>>, %arg13: memref<32x256xf32, #tpu.memory_space<vmem>>, %arg14: memref<1x256xf32, #tpu.memory_space<vmem>>, %arg15: memref<256x128xf32, #tpu.memory_space<vmem>>, %arg16: memref<1x128xf32, #tpu.memory_space<vmem>>, %arg17: memref<128x384xf32, #tpu.memory_space<vmem>>, %arg18: memref<1x384xf32, #tpu.memory_space<vmem>>, %arg19: memref<2x384xf32, #tpu.memory_space<vmem>>, %arg20: memref<2x32xf32, #tpu.memory_space<vmem>>) attributes {dimension_semantics = [], scalar_prefetch = 0 : i64, scratch_operands = 0 : i64, tpu.core_type = #tpu.core_type<tc>} {
    %c0 = arith.constant 0 : index
    %c0_0 = arith.constant 0 : index
    %0 = vector.load %arg0[%c0, %c0_0] : memref<16x32xf32, #tpu.memory_space<vmem>>, vector<16x32xf32>
    %c0_1 = arith.constant 0 : index
    %c0_2 = arith.constant 0 : index
    %1 = vector.load %arg1[%c0_1, %c0_2] : memref<16x16xf32, #tpu.memory_space<vmem>>, vector<16x16xf32>
    %c0_3 = arith.constant 0 : index
    %c0_4 = arith.constant 0 : index
    %c0_5 = arith.constant 0 : index
    %2 = vector.load %arg3[%c0_3, %c0_4, %c0_5] : memref<2x32x96xf32, #tpu.memory_space<vmem>>, vector<1x32x96xf32>
    %3 = vector.shape_cast %2 : vector<1x32x96xf32> to vector<32x96xf32>
    %cst = arith.constant dense<0.000000e+00> : vector<16x96xf32>
    %4 = tpu.matmul %0, %3, %cst {dimension_numbers = #tpu.dot_dimension_numbers<[1], [0], [0], [1], [0, 0, 1, 1], [], []>} : vector<16x32xf32>, vector<32x96xf32>, vector<16x96xf32> -> vector<16x96xf32>
    %c0_6 = arith.constant 0 : index
    %c0_7 = arith.constant 0 : index
    %c0_8 = arith.constant 0 : index
    %5 = vector.load %arg4[%c0_6, %c0_7, %c0_8] : memref<2x32x32xf32, #tpu.memory_space<vmem>>, vector<1x32x32xf32>
    %6 = vector.shape_cast %5 : vector<1x32x32xf32> to vector<32x32xf32>
    %7 = vector.extract_strided_slice %4 {offsets = [0, 0], sizes = [16, 8], strides = [1, 1]} : vector<16x96xf32> to vector<16x8xf32>
    %8 = vector.extract_strided_slice %4 {offsets = [0, 32], sizes = [16, 8], strides = [1, 1]} : vector<16x96xf32> to vector<16x8xf32>
    %9 = vector.extract_strided_slice %4 {offsets = [0, 64], sizes = [16, 8], strides = [1, 1]} : vector<16x96xf32> to vector<16x8xf32>
    %cst_9 = arith.constant dense<0.000000e+00> : vector<16x16xf32>
    %10 = tpu.matmul %7, %8, %cst_9 {dimension_numbers = #tpu.dot_dimension_numbers<[1], [1], [0], [0], [0, 0, 1, 0], [], []>} : vector<16x8xf32>, vector<16x8xf32>, vector<16x16xf32> -> vector<16x16xf32>
    %cst_10 = arith.constant 0.353553385 : f32
    %11 = vector.broadcast %cst_10 : f32 to vector<16x16xf32>
    %12 = arith.mulf %10, %11 : vector<16x16xf32>
    %13 = arith.addf %12, %1 : vector<16x16xf32>
    %cst_11 = arith.constant dense<0xFF800000> : vector<16xf32>
    %14 = vector.multi_reduction <maximumf>, %13, %cst_11 [1] : vector<16x16xf32> to vector<16xf32>
    %15 = vector.shape_cast %14 : vector<16xf32> to vector<16x1xf32>
    %16 = vector.broadcast %15 : vector<16x1xf32> to vector<16x16xf32>
    %17 = arith.subf %13, %16 : vector<16x16xf32>
    %18 = math.exp %17 : vector<16x16xf32>
    %cst_12 = arith.constant dense<0.000000e+00> : vector<16xf32>
    %19 = vector.multi_reduction <add>, %18, %cst_12 [1] : vector<16x16xf32> to vector<16xf32>
    %20 = vector.shape_cast %19 : vector<16xf32> to vector<16x1xf32>
    %21 = tpu.reciprocal %20 {approx = true} : vector<16x1xf32> -> vector<16x1xf32>
    %22 = vector.broadcast %21 : vector<16x1xf32> to vector<16x16xf32>
    %23 = arith.mulf %18, %22 : vector<16x16xf32>
    %cst_13 = arith.constant dense<0.000000e+00> : vector<16x8xf32>
    %24 = tpu.matmul %23, %9, %cst_13 {dimension_numbers = #tpu.dot_dimension_numbers<[1], [0], [0], [1], [0, 0, 1, 1], [], []>} : vector<16x16xf32>, vector<16x8xf32>, vector<16x8xf32> -> vector<16x8xf32>
    %25 = vector.extract_strided_slice %6 {offsets = [0, 0], sizes = [8, 32], strides = [1, 1]} : vector<32x32xf32> to vector<8x32xf32>
    %cst_14 = arith.constant dense<0.000000e+00> : vector<16x32xf32>
    %26 = tpu.matmul %24, %25, %cst_14 {dimension_numbers = #tpu.dot_dimension_numbers<[1], [0], [0], [1], [0, 0, 1, 1], [], []>} : vector<16x8xf32>, vector<8x32xf32>, vector<16x32xf32> -> vector<16x32xf32>
    %27 = vector.extract_strided_slice %4 {offsets = [0, 8], sizes = [16, 8], strides = [1, 1]} : vector<16x96xf32> to vector<16x8xf32>
    %28 = vector.extract_strided_slice %4 {offsets = [0, 40], sizes = [16, 8], strides = [1, 1]} : vector<16x96xf32> to vector<16x8xf32>
    %29 = vector.extract_strided_slice %4 {offsets = [0, 72], sizes = [16, 8], strides = [1, 1]} : vector<16x96xf32> to vector<16x8xf32>
    %cst_15 = arith.constant dense<0.000000e+00> : vector<16x16xf32>
    %30 = tpu.matmul %27, %28, %cst_15 {dimension_numbers = #tpu.dot_dimension_numbers<[1], [1], [0], [0], [0, 0, 1, 0], [], []>} : vector<16x8xf32>, vector<16x8xf32>, vector<16x16xf32> -> vector<16x16xf32>
    %cst_16 = arith.constant 0.353553385 : f32
    %31 = vector.broadcast %cst_16 : f32 to vector<16x16xf32>
    %32 = arith.mulf %30, %31 : vector<16x16xf32>
    %33 = arith.addf %32, %1 : vector<16x16xf32>
    %cst_17 = arith.constant dense<0xFF800000> : vector<16xf32>
    %34 = vector.multi_reduction <maximumf>, %33, %cst_17 [1] : vector<16x16xf32> to vector<16xf32>
    %35 = vector.shape_cast %34 : vector<16xf32> to vector<16x1xf32>
    %36 = vector.broadcast %35 : vector<16x1xf32> to vector<16x16xf32>
    %37 = arith.subf %33, %36 : vector<16x16xf32>
    %38 = math.exp %37 : vector<16x16xf32>
    %cst_18 = arith.constant dense<0.000000e+00> : vector<16xf32>
    %39 = vector.multi_reduction <add>, %38, %cst_18 [1] : vector<16x16xf32> to vector<16xf32>
    %40 = vector.shape_cast %39 : vector<16xf32> to vector<16x1xf32>
    %41 = tpu.reciprocal %40 {approx = true} : vector<16x1xf32> -> vector<16x1xf32>
    %42 = vector.broadcast %41 : vector<16x1xf32> to vector<16x16xf32>
    %43 = arith.mulf %38, %42 : vector<16x16xf32>
    %cst_19 = arith.constant dense<0.000000e+00> : vector<16x8xf32>
    %44 = tpu.matmul %43, %29, %cst_19 {dimension_numbers = #tpu.dot_dimension_numbers<[1], [0], [0], [1], [0, 0, 1, 1], [], []>} : vector<16x16xf32>, vector<16x8xf32>, vector<16x8xf32> -> vector<16x8xf32>
    %45 = vector.extract_strided_slice %6 {offsets = [8, 0], sizes = [8, 32], strides = [1, 1]} : vector<32x32xf32> to vector<8x32xf32>
    %cst_20 = arith.constant dense<0.000000e+00> : vector<16x32xf32>
    %46 = tpu.matmul %44, %45, %cst_20 {dimension_numbers = #tpu.dot_dimension_numbers<[1], [0], [0], [1], [0, 0, 1, 1], [], []>} : vector<16x8xf32>, vector<8x32xf32>, vector<16x32xf32> -> vector<16x32xf32>
    %47 = arith.addf %26, %46 : vector<16x32xf32>
    %48 = vector.extract_strided_slice %4 {offsets = [0, 16], sizes = [16, 8], strides = [1, 1]} : vector<16x96xf32> to vector<16x8xf32>
    %49 = vector.extract_strided_slice %4 {offsets = [0, 48], sizes = [16, 8], strides = [1, 1]} : vector<16x96xf32> to vector<16x8xf32>
    %50 = vector.extract_strided_slice %4 {offsets = [0, 80], sizes = [16, 8], strides = [1, 1]} : vector<16x96xf32> to vector<16x8xf32>
    %cst_21 = arith.constant dense<0.000000e+00> : vector<16x16xf32>
    %51 = tpu.matmul %48, %49, %cst_21 {dimension_numbers = #tpu.dot_dimension_numbers<[1], [1], [0], [0], [0, 0, 1, 0], [], []>} : vector<16x8xf32>, vector<16x8xf32>, vector<16x16xf32> -> vector<16x16xf32>
    %cst_22 = arith.constant 0.353553385 : f32
    %52 = vector.broadcast %cst_22 : f32 to vector<16x16xf32>
    %53 = arith.mulf %51, %52 : vector<16x16xf32>
    %54 = arith.addf %53, %1 : vector<16x16xf32>
    %cst_23 = arith.constant dense<0xFF800000> : vector<16xf32>
    %55 = vector.multi_reduction <maximumf>, %54, %cst_23 [1] : vector<16x16xf32> to vector<16xf32>
    %56 = vector.shape_cast %55 : vector<16xf32> to vector<16x1xf32>
    %57 = vector.broadcast %56 : vector<16x1xf32> to vector<16x16xf32>
    %58 = arith.subf %54, %57 : vector<16x16xf32>
    %59 = math.exp %58 : vector<16x16xf32>
    %cst_24 = arith.constant dense<0.000000e+00> : vector<16xf32>
    %60 = vector.multi_reduction <add>, %59, %cst_24 [1] : vector<16x16xf32> to vector<16xf32>
    %61 = vector.shape_cast %60 : vector<16xf32> to vector<16x1xf32>
    %62 = tpu.reciprocal %61 {approx = true} : vector<16x1xf32> -> vector<16x1xf32>
    %63 = vector.broadcast %62 : vector<16x1xf32> to vector<16x16xf32>
    %64 = arith.mulf %59, %63 : vector<16x16xf32>
    %cst_25 = arith.constant dense<0.000000e+00> : vector<16x8xf32>
    %65 = tpu.matmul %64, %50, %cst_25 {dimension_numbers = #tpu.dot_dimension_numbers<[1], [0], [0], [1], [0, 0, 1, 1], [], []>} : vector<16x16xf32>, vector<16x8xf32>, vector<16x8xf32> -> vector<16x8xf32>
    %66 = vector.extract_strided_slice %6 {offsets = [16, 0], sizes = [8, 32], strides = [1, 1]} : vector<32x32xf32> to vector<8x32xf32>
    %cst_26 = arith.constant dense<0.000000e+00> : vector<16x32xf32>
    %67 = tpu.matmul %65, %66, %cst_26 {dimension_numbers = #tpu.dot_dimension_numbers<[1], [0], [0], [1], [0, 0, 1, 1], [], []>} : vector<16x8xf32>, vector<8x32xf32>, vector<16x32xf32> -> vector<16x32xf32>
    %68 = arith.addf %47, %67 : vector<16x32xf32>
    %69 = vector.extract_strided_slice %4 {offsets = [0, 24], sizes = [16, 8], strides = [1, 1]} : vector<16x96xf32> to vector<16x8xf32>
    %70 = vector.extract_strided_slice %4 {offsets = [0, 56], sizes = [16, 8], strides = [1, 1]} : vector<16x96xf32> to vector<16x8xf32>
    %71 = vector.extract_strided_slice %4 {offsets = [0, 88], sizes = [16, 8], strides = [1, 1]} : vector<16x96xf32> to vector<16x8xf32>
    %cst_27 = arith.constant dense<0.000000e+00> : vector<16x16xf32>
    %72 = tpu.matmul %69, %70, %cst_27 {dimension_numbers = #tpu.dot_dimension_numbers<[1], [1], [0], [0], [0, 0, 1, 0], [], []>} : vector<16x8xf32>, vector<16x8xf32>, vector<16x16xf32> -> vector<16x16xf32>
    %cst_28 = arith.constant 0.353553385 : f32
    %73 = vector.broadcast %cst_28 : f32 to vector<16x16xf32>
    %74 = arith.mulf %72, %73 : vector<16x16xf32>
    %75 = arith.addf %74, %1 : vector<16x16xf32>
    %cst_29 = arith.constant dense<0xFF800000> : vector<16xf32>
    %76 = vector.multi_reduction <maximumf>, %75, %cst_29 [1] : vector<16x16xf32> to vector<16xf32>
    %77 = vector.shape_cast %76 : vector<16xf32> to vector<16x1xf32>
    %78 = vector.broadcast %77 : vector<16x1xf32> to vector<16x16xf32>
    %79 = arith.subf %75, %78 : vector<16x16xf32>
    %80 = math.exp %79 : vector<16x16xf32>
    %cst_30 = arith.constant dense<0.000000e+00> : vector<16xf32>
    %81 = vector.multi_reduction <add>, %80, %cst_30 [1] : vector<16x16xf32> to vector<16xf32>
    %82 = vector.shape_cast %81 : vector<16xf32> to vector<16x1xf32>
    %83 = tpu.reciprocal %82 {approx = true} : vector<16x1xf32> -> vector<16x1xf32>
    %84 = vector.broadcast %83 : vector<16x1xf32> to vector<16x16xf32>
    %85 = arith.mulf %80, %84 : vector<16x16xf32>
    %cst_31 = arith.constant dense<0.000000e+00> : vector<16x8xf32>
    %86 = tpu.matmul %85, %71, %cst_31 {dimension_numbers = #tpu.dot_dimension_numbers<[1], [0], [0], [1], [0, 0, 1, 1], [], []>} : vector<16x16xf32>, vector<16x8xf32>, vector<16x8xf32> -> vector<16x8xf32>
    %87 = vector.extract_strided_slice %6 {offsets = [24, 0], sizes = [8, 32], strides = [1, 1]} : vector<32x32xf32> to vector<8x32xf32>
    %cst_32 = arith.constant dense<0.000000e+00> : vector<16x32xf32>
    %88 = tpu.matmul %86, %87, %cst_32 {dimension_numbers = #tpu.dot_dimension_numbers<[1], [0], [0], [1], [0, 0, 1, 1], [], []>} : vector<16x8xf32>, vector<8x32xf32>, vector<16x32xf32> -> vector<16x32xf32>
    %89 = arith.addf %68, %88 : vector<16x32xf32>
    %90 = arith.addf %89, %0 : vector<16x32xf32>
    %c0_33 = arith.constant 0 : index
    %c0_34 = arith.constant 0 : index
    %c0_35 = arith.constant 0 : index
    %91 = vector.load %arg5[%c0_33, %c0_34, %c0_35] : memref<2x1x32xf32, #tpu.memory_space<vmem>>, vector<1x1x32xf32>
    %92 = vector.shape_cast %91 : vector<1x1x32xf32> to vector<1x32xf32>
    %c0_36 = arith.constant 0 : index
    %c0_37 = arith.constant 0 : index
    %c0_38 = arith.constant 0 : index
    %93 = vector.load %arg6[%c0_36, %c0_37, %c0_38] : memref<2x1x32xf32, #tpu.memory_space<vmem>>, vector<1x1x32xf32>
    %94 = vector.shape_cast %93 : vector<1x1x32xf32> to vector<1x32xf32>
    %cst_39 = arith.constant dense<0.000000e+00> : vector<16xf32>
    %95 = vector.multi_reduction <add>, %90, %cst_39 [1] : vector<16x32xf32> to vector<16xf32>
    %96 = vector.shape_cast %95 : vector<16xf32> to vector<16x1xf32>
    %cst_40 = arith.constant 3.200000e+01 : f32
    %97 = vector.broadcast %cst_40 : f32 to vector<16x1xf32>
    %98 = arith.divf %96, %97 : vector<16x1xf32>
    %99 = arith.mulf %90, %90 : vector<16x32xf32>
    %cst_41 = arith.constant dense<0.000000e+00> : vector<16xf32>
    %100 = vector.multi_reduction <add>, %99, %cst_41 [1] : vector<16x32xf32> to vector<16xf32>
    %101 = vector.shape_cast %100 : vector<16xf32> to vector<16x1xf32>
    %cst_42 = arith.constant 3.200000e+01 : f32
    %102 = vector.broadcast %cst_42 : f32 to vector<16x1xf32>
    %103 = arith.divf %101, %102 : vector<16x1xf32>
    %104 = arith.mulf %98, %98 : vector<16x1xf32>
    %105 = arith.subf %103, %104 : vector<16x1xf32>
    %106 = vector.broadcast %98 : vector<16x1xf32> to vector<16x32xf32>
    %107 = arith.subf %90, %106 : vector<16x32xf32>
    %cst_43 = arith.constant 9.99999997E-7 : f32
    %108 = vector.broadcast %cst_43 : f32 to vector<16x1xf32>
    %109 = arith.addf %105, %108 : vector<16x1xf32>
    %110 = math.rsqrt %109 : vector<16x1xf32>
    %111 = vector.broadcast %110 : vector<16x1xf32> to vector<16x32xf32>
    %112 = arith.mulf %107, %111 : vector<16x32xf32>
    %113 = vector.broadcast %92 : vector<1x32xf32> to vector<16x32xf32>
    %114 = arith.mulf %112, %113 : vector<16x32xf32>
    %115 = vector.broadcast %94 : vector<1x32xf32> to vector<16x32xf32>
    %116 = arith.addf %114, %115 : vector<16x32xf32>
    %c0_44 = arith.constant 0 : index
    %c0_45 = arith.constant 0 : index
    %c0_46 = arith.constant 0 : index
    %117 = vector.load %arg7[%c0_44, %c0_45, %c0_46] : memref<2x32x64xf32, #tpu.memory_space<vmem>>, vector<1x32x64xf32>
    %118 = vector.shape_cast %117 : vector<1x32x64xf32> to vector<32x64xf32>
    %cst_47 = arith.constant dense<0.000000e+00> : vector<16x64xf32>
    %119 = tpu.matmul %116, %118, %cst_47 {dimension_numbers = #tpu.dot_dimension_numbers<[1], [0], [0], [1], [0, 0, 1, 1], [], []>} : vector<16x32xf32>, vector<32x64xf32>, vector<16x64xf32> -> vector<16x64xf32>
    %c0_48 = arith.constant 0 : index
    %c0_49 = arith.constant 0 : index
    %c0_50 = arith.constant 0 : index
    %120 = vector.load %arg8[%c0_48, %c0_49, %c0_50] : memref<2x1x64xf32, #tpu.memory_space<vmem>>, vector<1x1x64xf32>
    %121 = vector.shape_cast %120 : vector<1x1x64xf32> to vector<1x64xf32>
    %122 = vector.broadcast %121 : vector<1x64xf32> to vector<16x64xf32>
    %123 = arith.addf %119, %122 : vector<16x64xf32>
    %cst_51 = arith.constant 0.000000e+00 : f32
    %124 = vector.broadcast %cst_51 : f32 to vector<16x64xf32>
    %125 = arith.maximumf %123, %124 : vector<16x64xf32>
    %c0_52 = arith.constant 0 : index
    %c0_53 = arith.constant 0 : index
    %c0_54 = arith.constant 0 : index
    %126 = vector.load %arg9[%c0_52, %c0_53, %c0_54] : memref<2x64x32xf32, #tpu.memory_space<vmem>>, vector<1x64x32xf32>
    %127 = vector.shape_cast %126 : vector<1x64x32xf32> to vector<64x32xf32>
    %cst_55 = arith.constant dense<0.000000e+00> : vector<16x32xf32>
    %128 = tpu.matmul %125, %127, %cst_55 {dimension_numbers = #tpu.dot_dimension_numbers<[1], [0], [0], [1], [0, 0, 1, 1], [], []>} : vector<16x64xf32>, vector<64x32xf32>, vector<16x32xf32> -> vector<16x32xf32>
    %c0_56 = arith.constant 0 : index
    %c0_57 = arith.constant 0 : index
    %c0_58 = arith.constant 0 : index
    %129 = vector.load %arg10[%c0_56, %c0_57, %c0_58] : memref<2x1x32xf32, #tpu.memory_space<vmem>>, vector<1x1x32xf32>
    %130 = vector.shape_cast %129 : vector<1x1x32xf32> to vector<1x32xf32>
    %131 = vector.broadcast %130 : vector<1x32xf32> to vector<16x32xf32>
    %132 = arith.addf %128, %131 : vector<16x32xf32>
    %133 = arith.addf %132, %116 : vector<16x32xf32>
    %c0_59 = arith.constant 0 : index
    %c0_60 = arith.constant 0 : index
    %c0_61 = arith.constant 0 : index
    %134 = vector.load %arg11[%c0_59, %c0_60, %c0_61] : memref<2x1x32xf32, #tpu.memory_space<vmem>>, vector<1x1x32xf32>
    %135 = vector.shape_cast %134 : vector<1x1x32xf32> to vector<1x32xf32>
    %c0_62 = arith.constant 0 : index
    %c0_63 = arith.constant 0 : index
    %c0_64 = arith.constant 0 : index
    %136 = vector.load %arg12[%c0_62, %c0_63, %c0_64] : memref<2x1x32xf32, #tpu.memory_space<vmem>>, vector<1x1x32xf32>
    %137 = vector.shape_cast %136 : vector<1x1x32xf32> to vector<1x32xf32>
    %cst_65 = arith.constant dense<0.000000e+00> : vector<16xf32>
    %138 = vector.multi_reduction <add>, %133, %cst_65 [1] : vector<16x32xf32> to vector<16xf32>
    %139 = vector.shape_cast %138 : vector<16xf32> to vector<16x1xf32>
    %cst_66 = arith.constant 3.200000e+01 : f32
    %140 = vector.broadcast %cst_66 : f32 to vector<16x1xf32>
    %141 = arith.divf %139, %140 : vector<16x1xf32>
    %142 = arith.mulf %133, %133 : vector<16x32xf32>
    %cst_67 = arith.constant dense<0.000000e+00> : vector<16xf32>
    %143 = vector.multi_reduction <add>, %142, %cst_67 [1] : vector<16x32xf32> to vector<16xf32>
    %144 = vector.shape_cast %143 : vector<16xf32> to vector<16x1xf32>
    %cst_68 = arith.constant 3.200000e+01 : f32
    %145 = vector.broadcast %cst_68 : f32 to vector<16x1xf32>
    %146 = arith.divf %144, %145 : vector<16x1xf32>
    %147 = arith.mulf %141, %141 : vector<16x1xf32>
    %148 = arith.subf %146, %147 : vector<16x1xf32>
    %149 = vector.broadcast %141 : vector<16x1xf32> to vector<16x32xf32>
    %150 = arith.subf %133, %149 : vector<16x32xf32>
    %cst_69 = arith.constant 9.99999997E-7 : f32
    %151 = vector.broadcast %cst_69 : f32 to vector<16x1xf32>
    %152 = arith.addf %148, %151 : vector<16x1xf32>
    %153 = math.rsqrt %152 : vector<16x1xf32>
    %154 = vector.broadcast %153 : vector<16x1xf32> to vector<16x32xf32>
    %155 = arith.mulf %150, %154 : vector<16x32xf32>
    %156 = vector.broadcast %135 : vector<1x32xf32> to vector<16x32xf32>
    %157 = arith.mulf %155, %156 : vector<16x32xf32>
    %158 = vector.broadcast %137 : vector<1x32xf32> to vector<16x32xf32>
    %159 = arith.addf %157, %158 : vector<16x32xf32>
    %c1 = arith.constant 1 : index
    %c0_70 = arith.constant 0 : index
    %c0_71 = arith.constant 0 : index
    %160 = vector.load %arg3[%c1, %c0_70, %c0_71] : memref<2x32x96xf32, #tpu.memory_space<vmem>>, vector<1x32x96xf32>
    %161 = vector.shape_cast %160 : vector<1x32x96xf32> to vector<32x96xf32>
    %cst_72 = arith.constant dense<0.000000e+00> : vector<16x96xf32>
    %162 = tpu.matmul %159, %161, %cst_72 {dimension_numbers = #tpu.dot_dimension_numbers<[1], [0], [0], [1], [0, 0, 1, 1], [], []>} : vector<16x32xf32>, vector<32x96xf32>, vector<16x96xf32> -> vector<16x96xf32>
    %c1_73 = arith.constant 1 : index
    %c0_74 = arith.constant 0 : index
    %c0_75 = arith.constant 0 : index
    %163 = vector.load %arg4[%c1_73, %c0_74, %c0_75] : memref<2x32x32xf32, #tpu.memory_space<vmem>>, vector<1x32x32xf32>
    %164 = vector.shape_cast %163 : vector<1x32x32xf32> to vector<32x32xf32>
    %165 = vector.extract_strided_slice %162 {offsets = [0, 0], sizes = [16, 8], strides = [1, 1]} : vector<16x96xf32> to vector<16x8xf32>
    %166 = vector.extract_strided_slice %162 {offsets = [0, 32], sizes = [16, 8], strides = [1, 1]} : vector<16x96xf32> to vector<16x8xf32>
    %167 = vector.extract_strided_slice %162 {offsets = [0, 64], sizes = [16, 8], strides = [1, 1]} : vector<16x96xf32> to vector<16x8xf32>
    %cst_76 = arith.constant dense<0.000000e+00> : vector<16x16xf32>
    %168 = tpu.matmul %165, %166, %cst_76 {dimension_numbers = #tpu.dot_dimension_numbers<[1], [1], [0], [0], [0, 0, 1, 0], [], []>} : vector<16x8xf32>, vector<16x8xf32>, vector<16x16xf32> -> vector<16x16xf32>
    %cst_77 = arith.constant 0.353553385 : f32
    %169 = vector.broadcast %cst_77 : f32 to vector<16x16xf32>
    %170 = arith.mulf %168, %169 : vector<16x16xf32>
    %171 = arith.addf %170, %1 : vector<16x16xf32>
    %cst_78 = arith.constant dense<0xFF800000> : vector<16xf32>
    %172 = vector.multi_reduction <maximumf>, %171, %cst_78 [1] : vector<16x16xf32> to vector<16xf32>
    %173 = vector.shape_cast %172 : vector<16xf32> to vector<16x1xf32>
    %174 = vector.broadcast %173 : vector<16x1xf32> to vector<16x16xf32>
    %175 = arith.subf %171, %174 : vector<16x16xf32>
    %176 = math.exp %175 : vector<16x16xf32>
    %cst_79 = arith.constant dense<0.000000e+00> : vector<16xf32>
    %177 = vector.multi_reduction <add>, %176, %cst_79 [1] : vector<16x16xf32> to vector<16xf32>
    %178 = vector.shape_cast %177 : vector<16xf32> to vector<16x1xf32>
    %179 = tpu.reciprocal %178 {approx = true} : vector<16x1xf32> -> vector<16x1xf32>
    %180 = vector.broadcast %179 : vector<16x1xf32> to vector<16x16xf32>
    %181 = arith.mulf %176, %180 : vector<16x16xf32>
    %cst_80 = arith.constant dense<0.000000e+00> : vector<16x8xf32>
    %182 = tpu.matmul %181, %167, %cst_80 {dimension_numbers = #tpu.dot_dimension_numbers<[1], [0], [0], [1], [0, 0, 1, 1], [], []>} : vector<16x16xf32>, vector<16x8xf32>, vector<16x8xf32> -> vector<16x8xf32>
    %183 = vector.extract_strided_slice %164 {offsets = [0, 0], sizes = [8, 32], strides = [1, 1]} : vector<32x32xf32> to vector<8x32xf32>
    %cst_81 = arith.constant dense<0.000000e+00> : vector<16x32xf32>
    %184 = tpu.matmul %182, %183, %cst_81 {dimension_numbers = #tpu.dot_dimension_numbers<[1], [0], [0], [1], [0, 0, 1, 1], [], []>} : vector<16x8xf32>, vector<8x32xf32>, vector<16x32xf32> -> vector<16x32xf32>
    %185 = vector.extract_strided_slice %162 {offsets = [0, 8], sizes = [16, 8], strides = [1, 1]} : vector<16x96xf32> to vector<16x8xf32>
    %186 = vector.extract_strided_slice %162 {offsets = [0, 40], sizes = [16, 8], strides = [1, 1]} : vector<16x96xf32> to vector<16x8xf32>
    %187 = vector.extract_strided_slice %162 {offsets = [0, 72], sizes = [16, 8], strides = [1, 1]} : vector<16x96xf32> to vector<16x8xf32>
    %cst_82 = arith.constant dense<0.000000e+00> : vector<16x16xf32>
    %188 = tpu.matmul %185, %186, %cst_82 {dimension_numbers = #tpu.dot_dimension_numbers<[1], [1], [0], [0], [0, 0, 1, 0], [], []>} : vector<16x8xf32>, vector<16x8xf32>, vector<16x16xf32> -> vector<16x16xf32>
    %cst_83 = arith.constant 0.353553385 : f32
    %189 = vector.broadcast %cst_83 : f32 to vector<16x16xf32>
    %190 = arith.mulf %188, %189 : vector<16x16xf32>
    %191 = arith.addf %190, %1 : vector<16x16xf32>
    %cst_84 = arith.constant dense<0xFF800000> : vector<16xf32>
    %192 = vector.multi_reduction <maximumf>, %191, %cst_84 [1] : vector<16x16xf32> to vector<16xf32>
    %193 = vector.shape_cast %192 : vector<16xf32> to vector<16x1xf32>
    %194 = vector.broadcast %193 : vector<16x1xf32> to vector<16x16xf32>
    %195 = arith.subf %191, %194 : vector<16x16xf32>
    %196 = math.exp %195 : vector<16x16xf32>
    %cst_85 = arith.constant dense<0.000000e+00> : vector<16xf32>
    %197 = vector.multi_reduction <add>, %196, %cst_85 [1] : vector<16x16xf32> to vector<16xf32>
    %198 = vector.shape_cast %197 : vector<16xf32> to vector<16x1xf32>
    %199 = tpu.reciprocal %198 {approx = true} : vector<16x1xf32> -> vector<16x1xf32>
    %200 = vector.broadcast %199 : vector<16x1xf32> to vector<16x16xf32>
    %201 = arith.mulf %196, %200 : vector<16x16xf32>
    %cst_86 = arith.constant dense<0.000000e+00> : vector<16x8xf32>
    %202 = tpu.matmul %201, %187, %cst_86 {dimension_numbers = #tpu.dot_dimension_numbers<[1], [0], [0], [1], [0, 0, 1, 1], [], []>} : vector<16x16xf32>, vector<16x8xf32>, vector<16x8xf32> -> vector<16x8xf32>
    %203 = vector.extract_strided_slice %164 {offsets = [8, 0], sizes = [8, 32], strides = [1, 1]} : vector<32x32xf32> to vector<8x32xf32>
    %cst_87 = arith.constant dense<0.000000e+00> : vector<16x32xf32>
    %204 = tpu.matmul %202, %203, %cst_87 {dimension_numbers = #tpu.dot_dimension_numbers<[1], [0], [0], [1], [0, 0, 1, 1], [], []>} : vector<16x8xf32>, vector<8x32xf32>, vector<16x32xf32> -> vector<16x32xf32>
    %205 = arith.addf %184, %204 : vector<16x32xf32>
    %206 = vector.extract_strided_slice %162 {offsets = [0, 16], sizes = [16, 8], strides = [1, 1]} : vector<16x96xf32> to vector<16x8xf32>
    %207 = vector.extract_strided_slice %162 {offsets = [0, 48], sizes = [16, 8], strides = [1, 1]} : vector<16x96xf32> to vector<16x8xf32>
    %208 = vector.extract_strided_slice %162 {offsets = [0, 80], sizes = [16, 8], strides = [1, 1]} : vector<16x96xf32> to vector<16x8xf32>
    %cst_88 = arith.constant dense<0.000000e+00> : vector<16x16xf32>
    %209 = tpu.matmul %206, %207, %cst_88 {dimension_numbers = #tpu.dot_dimension_numbers<[1], [1], [0], [0], [0, 0, 1, 0], [], []>} : vector<16x8xf32>, vector<16x8xf32>, vector<16x16xf32> -> vector<16x16xf32>
    %cst_89 = arith.constant 0.353553385 : f32
    %210 = vector.broadcast %cst_89 : f32 to vector<16x16xf32>
    %211 = arith.mulf %209, %210 : vector<16x16xf32>
    %212 = arith.addf %211, %1 : vector<16x16xf32>
    %cst_90 = arith.constant dense<0xFF800000> : vector<16xf32>
    %213 = vector.multi_reduction <maximumf>, %212, %cst_90 [1] : vector<16x16xf32> to vector<16xf32>
    %214 = vector.shape_cast %213 : vector<16xf32> to vector<16x1xf32>
    %215 = vector.broadcast %214 : vector<16x1xf32> to vector<16x16xf32>
    %216 = arith.subf %212, %215 : vector<16x16xf32>
    %217 = math.exp %216 : vector<16x16xf32>
    %cst_91 = arith.constant dense<0.000000e+00> : vector<16xf32>
    %218 = vector.multi_reduction <add>, %217, %cst_91 [1] : vector<16x16xf32> to vector<16xf32>
    %219 = vector.shape_cast %218 : vector<16xf32> to vector<16x1xf32>
    %220 = tpu.reciprocal %219 {approx = true} : vector<16x1xf32> -> vector<16x1xf32>
    %221 = vector.broadcast %220 : vector<16x1xf32> to vector<16x16xf32>
    %222 = arith.mulf %217, %221 : vector<16x16xf32>
    %cst_92 = arith.constant dense<0.000000e+00> : vector<16x8xf32>
    %223 = tpu.matmul %222, %208, %cst_92 {dimension_numbers = #tpu.dot_dimension_numbers<[1], [0], [0], [1], [0, 0, 1, 1], [], []>} : vector<16x16xf32>, vector<16x8xf32>, vector<16x8xf32> -> vector<16x8xf32>
    %224 = vector.extract_strided_slice %164 {offsets = [16, 0], sizes = [8, 32], strides = [1, 1]} : vector<32x32xf32> to vector<8x32xf32>
    %cst_93 = arith.constant dense<0.000000e+00> : vector<16x32xf32>
    %225 = tpu.matmul %223, %224, %cst_93 {dimension_numbers = #tpu.dot_dimension_numbers<[1], [0], [0], [1], [0, 0, 1, 1], [], []>} : vector<16x8xf32>, vector<8x32xf32>, vector<16x32xf32> -> vector<16x32xf32>
    %226 = arith.addf %205, %225 : vector<16x32xf32>
    %227 = vector.extract_strided_slice %162 {offsets = [0, 24], sizes = [16, 8], strides = [1, 1]} : vector<16x96xf32> to vector<16x8xf32>
    %228 = vector.extract_strided_slice %162 {offsets = [0, 56], sizes = [16, 8], strides = [1, 1]} : vector<16x96xf32> to vector<16x8xf32>
    %229 = vector.extract_strided_slice %162 {offsets = [0, 88], sizes = [16, 8], strides = [1, 1]} : vector<16x96xf32> to vector<16x8xf32>
    %cst_94 = arith.constant dense<0.000000e+00> : vector<16x16xf32>
    %230 = tpu.matmul %227, %228, %cst_94 {dimension_numbers = #tpu.dot_dimension_numbers<[1], [1], [0], [0], [0, 0, 1, 0], [], []>} : vector<16x8xf32>, vector<16x8xf32>, vector<16x16xf32> -> vector<16x16xf32>
    %cst_95 = arith.constant 0.353553385 : f32
    %231 = vector.broadcast %cst_95 : f32 to vector<16x16xf32>
    %232 = arith.mulf %230, %231 : vector<16x16xf32>
    %233 = arith.addf %232, %1 : vector<16x16xf32>
    %cst_96 = arith.constant dense<0xFF800000> : vector<16xf32>
    %234 = vector.multi_reduction <maximumf>, %233, %cst_96 [1] : vector<16x16xf32> to vector<16xf32>
    %235 = vector.shape_cast %234 : vector<16xf32> to vector<16x1xf32>
    %236 = vector.broadcast %235 : vector<16x1xf32> to vector<16x16xf32>
    %237 = arith.subf %233, %236 : vector<16x16xf32>
    %238 = math.exp %237 : vector<16x16xf32>
    %cst_97 = arith.constant dense<0.000000e+00> : vector<16xf32>
    %239 = vector.multi_reduction <add>, %238, %cst_97 [1] : vector<16x16xf32> to vector<16xf32>
    %240 = vector.shape_cast %239 : vector<16xf32> to vector<16x1xf32>
    %241 = tpu.reciprocal %240 {approx = true} : vector<16x1xf32> -> vector<16x1xf32>
    %242 = vector.broadcast %241 : vector<16x1xf32> to vector<16x16xf32>
    %243 = arith.mulf %238, %242 : vector<16x16xf32>
    %cst_98 = arith.constant dense<0.000000e+00> : vector<16x8xf32>
    %244 = tpu.matmul %243, %229, %cst_98 {dimension_numbers = #tpu.dot_dimension_numbers<[1], [0], [0], [1], [0, 0, 1, 1], [], []>} : vector<16x16xf32>, vector<16x8xf32>, vector<16x8xf32> -> vector<16x8xf32>
    %245 = vector.extract_strided_slice %164 {offsets = [24, 0], sizes = [8, 32], strides = [1, 1]} : vector<32x32xf32> to vector<8x32xf32>
    %cst_99 = arith.constant dense<0.000000e+00> : vector<16x32xf32>
    %246 = tpu.matmul %244, %245, %cst_99 {dimension_numbers = #tpu.dot_dimension_numbers<[1], [0], [0], [1], [0, 0, 1, 1], [], []>} : vector<16x8xf32>, vector<8x32xf32>, vector<16x32xf32> -> vector<16x32xf32>
    %247 = arith.addf %226, %246 : vector<16x32xf32>
    %248 = arith.addf %247, %159 : vector<16x32xf32>
    %c1_100 = arith.constant 1 : index
    %c0_101 = arith.constant 0 : index
    %c0_102 = arith.constant 0 : index
    %249 = vector.load %arg5[%c1_100, %c0_101, %c0_102] : memref<2x1x32xf32, #tpu.memory_space<vmem>>, vector<1x1x32xf32>
    %250 = vector.shape_cast %249 : vector<1x1x32xf32> to vector<1x32xf32>
    %c1_103 = arith.constant 1 : index
    %c0_104 = arith.constant 0 : index
    %c0_105 = arith.constant 0 : index
    %251 = vector.load %arg6[%c1_103, %c0_104, %c0_105] : memref<2x1x32xf32, #tpu.memory_space<vmem>>, vector<1x1x32xf32>
    %252 = vector.shape_cast %251 : vector<1x1x32xf32> to vector<1x32xf32>
    %cst_106 = arith.constant dense<0.000000e+00> : vector<16xf32>
    %253 = vector.multi_reduction <add>, %248, %cst_106 [1] : vector<16x32xf32> to vector<16xf32>
    %254 = vector.shape_cast %253 : vector<16xf32> to vector<16x1xf32>
    %cst_107 = arith.constant 3.200000e+01 : f32
    %255 = vector.broadcast %cst_107 : f32 to vector<16x1xf32>
    %256 = arith.divf %254, %255 : vector<16x1xf32>
    %257 = arith.mulf %248, %248 : vector<16x32xf32>
    %cst_108 = arith.constant dense<0.000000e+00> : vector<16xf32>
    %258 = vector.multi_reduction <add>, %257, %cst_108 [1] : vector<16x32xf32> to vector<16xf32>
    %259 = vector.shape_cast %258 : vector<16xf32> to vector<16x1xf32>
    %cst_109 = arith.constant 3.200000e+01 : f32
    %260 = vector.broadcast %cst_109 : f32 to vector<16x1xf32>
    %261 = arith.divf %259, %260 : vector<16x1xf32>
    %262 = arith.mulf %256, %256 : vector<16x1xf32>
    %263 = arith.subf %261, %262 : vector<16x1xf32>
    %264 = vector.broadcast %256 : vector<16x1xf32> to vector<16x32xf32>
    %265 = arith.subf %248, %264 : vector<16x32xf32>
    %cst_110 = arith.constant 9.99999997E-7 : f32
    %266 = vector.broadcast %cst_110 : f32 to vector<16x1xf32>
    %267 = arith.addf %263, %266 : vector<16x1xf32>
    %268 = math.rsqrt %267 : vector<16x1xf32>
    %269 = vector.broadcast %268 : vector<16x1xf32> to vector<16x32xf32>
    %270 = arith.mulf %265, %269 : vector<16x32xf32>
    %271 = vector.broadcast %250 : vector<1x32xf32> to vector<16x32xf32>
    %272 = arith.mulf %270, %271 : vector<16x32xf32>
    %273 = vector.broadcast %252 : vector<1x32xf32> to vector<16x32xf32>
    %274 = arith.addf %272, %273 : vector<16x32xf32>
    %c1_111 = arith.constant 1 : index
    %c0_112 = arith.constant 0 : index
    %c0_113 = arith.constant 0 : index
    %275 = vector.load %arg7[%c1_111, %c0_112, %c0_113] : memref<2x32x64xf32, #tpu.memory_space<vmem>>, vector<1x32x64xf32>
    %276 = vector.shape_cast %275 : vector<1x32x64xf32> to vector<32x64xf32>
    %cst_114 = arith.constant dense<0.000000e+00> : vector<16x64xf32>
    %277 = tpu.matmul %274, %276, %cst_114 {dimension_numbers = #tpu.dot_dimension_numbers<[1], [0], [0], [1], [0, 0, 1, 1], [], []>} : vector<16x32xf32>, vector<32x64xf32>, vector<16x64xf32> -> vector<16x64xf32>
    %c1_115 = arith.constant 1 : index
    %c0_116 = arith.constant 0 : index
    %c0_117 = arith.constant 0 : index
    %278 = vector.load %arg8[%c1_115, %c0_116, %c0_117] : memref<2x1x64xf32, #tpu.memory_space<vmem>>, vector<1x1x64xf32>
    %279 = vector.shape_cast %278 : vector<1x1x64xf32> to vector<1x64xf32>
    %280 = vector.broadcast %279 : vector<1x64xf32> to vector<16x64xf32>
    %281 = arith.addf %277, %280 : vector<16x64xf32>
    %cst_118 = arith.constant 0.000000e+00 : f32
    %282 = vector.broadcast %cst_118 : f32 to vector<16x64xf32>
    %283 = arith.maximumf %281, %282 : vector<16x64xf32>
    %c1_119 = arith.constant 1 : index
    %c0_120 = arith.constant 0 : index
    %c0_121 = arith.constant 0 : index
    %284 = vector.load %arg9[%c1_119, %c0_120, %c0_121] : memref<2x64x32xf32, #tpu.memory_space<vmem>>, vector<1x64x32xf32>
    %285 = vector.shape_cast %284 : vector<1x64x32xf32> to vector<64x32xf32>
    %cst_122 = arith.constant dense<0.000000e+00> : vector<16x32xf32>
    %286 = tpu.matmul %283, %285, %cst_122 {dimension_numbers = #tpu.dot_dimension_numbers<[1], [0], [0], [1], [0, 0, 1, 1], [], []>} : vector<16x64xf32>, vector<64x32xf32>, vector<16x32xf32> -> vector<16x32xf32>
    %c1_123 = arith.constant 1 : index
    %c0_124 = arith.constant 0 : index
    %c0_125 = arith.constant 0 : index
    %287 = vector.load %arg10[%c1_123, %c0_124, %c0_125] : memref<2x1x32xf32, #tpu.memory_space<vmem>>, vector<1x1x32xf32>
    %288 = vector.shape_cast %287 : vector<1x1x32xf32> to vector<1x32xf32>
    %289 = vector.broadcast %288 : vector<1x32xf32> to vector<16x32xf32>
    %290 = arith.addf %286, %289 : vector<16x32xf32>
    %291 = arith.addf %290, %274 : vector<16x32xf32>
    %c1_126 = arith.constant 1 : index
    %c0_127 = arith.constant 0 : index
    %c0_128 = arith.constant 0 : index
    %292 = vector.load %arg11[%c1_126, %c0_127, %c0_128] : memref<2x1x32xf32, #tpu.memory_space<vmem>>, vector<1x1x32xf32>
    %293 = vector.shape_cast %292 : vector<1x1x32xf32> to vector<1x32xf32>
    %c1_129 = arith.constant 1 : index
    %c0_130 = arith.constant 0 : index
    %c0_131 = arith.constant 0 : index
    %294 = vector.load %arg12[%c1_129, %c0_130, %c0_131] : memref<2x1x32xf32, #tpu.memory_space<vmem>>, vector<1x1x32xf32>
    %295 = vector.shape_cast %294 : vector<1x1x32xf32> to vector<1x32xf32>
    %cst_132 = arith.constant dense<0.000000e+00> : vector<16xf32>
    %296 = vector.multi_reduction <add>, %291, %cst_132 [1] : vector<16x32xf32> to vector<16xf32>
    %297 = vector.shape_cast %296 : vector<16xf32> to vector<16x1xf32>
    %cst_133 = arith.constant 3.200000e+01 : f32
    %298 = vector.broadcast %cst_133 : f32 to vector<16x1xf32>
    %299 = arith.divf %297, %298 : vector<16x1xf32>
    %300 = arith.mulf %291, %291 : vector<16x32xf32>
    %cst_134 = arith.constant dense<0.000000e+00> : vector<16xf32>
    %301 = vector.multi_reduction <add>, %300, %cst_134 [1] : vector<16x32xf32> to vector<16xf32>
    %302 = vector.shape_cast %301 : vector<16xf32> to vector<16x1xf32>
    %cst_135 = arith.constant 3.200000e+01 : f32
    %303 = vector.broadcast %cst_135 : f32 to vector<16x1xf32>
    %304 = arith.divf %302, %303 : vector<16x1xf32>
    %305 = arith.mulf %299, %299 : vector<16x1xf32>
    %306 = arith.subf %304, %305 : vector<16x1xf32>
    %307 = vector.broadcast %299 : vector<16x1xf32> to vector<16x32xf32>
    %308 = arith.subf %291, %307 : vector<16x32xf32>
    %cst_136 = arith.constant 9.99999997E-7 : f32
    %309 = vector.broadcast %cst_136 : f32 to vector<16x1xf32>
    %310 = arith.addf %306, %309 : vector<16x1xf32>
    %311 = math.rsqrt %310 : vector<16x1xf32>
    %312 = vector.broadcast %311 : vector<16x1xf32> to vector<16x32xf32>
    %313 = arith.mulf %308, %312 : vector<16x32xf32>
    %314 = vector.broadcast %293 : vector<1x32xf32> to vector<16x32xf32>
    %315 = arith.mulf %313, %314 : vector<16x32xf32>
    %316 = vector.broadcast %295 : vector<1x32xf32> to vector<16x32xf32>
    %317 = arith.addf %315, %316 : vector<16x32xf32>
    %c0_137 = arith.constant 0 : index
    %c0_138 = arith.constant 0 : index
    %318 = vector.load %arg2[%c0_137, %c0_138] : memref<2x16xf32, #tpu.memory_space<vmem>>, vector<2x16xf32>
    %cst_139 = arith.constant dense<0.000000e+00> : vector<2x32xf32>
    %319 = tpu.matmul %318, %317, %cst_139 {dimension_numbers = #tpu.dot_dimension_numbers<[1], [0], [0], [1], [0, 0, 1, 1], [], []>} : vector<2x16xf32>, vector<16x32xf32>, vector<2x32xf32> -> vector<2x32xf32>
    %c0_140 = arith.constant 0 : index
    %c0_141 = arith.constant 0 : index
    %320 = vector.load %arg13[%c0_140, %c0_141] : memref<32x256xf32, #tpu.memory_space<vmem>>, vector<32x256xf32>
    %cst_142 = arith.constant dense<0.000000e+00> : vector<2x256xf32>
    %321 = tpu.matmul %319, %320, %cst_142 {dimension_numbers = #tpu.dot_dimension_numbers<[1], [0], [0], [1], [0, 0, 1, 1], [], []>} : vector<2x32xf32>, vector<32x256xf32>, vector<2x256xf32> -> vector<2x256xf32>
    %c0_143 = arith.constant 0 : index
    %c0_144 = arith.constant 0 : index
    %322 = vector.load %arg14[%c0_143, %c0_144] : memref<1x256xf32, #tpu.memory_space<vmem>>, vector<1x256xf32>
    %323 = vector.broadcast %322 : vector<1x256xf32> to vector<2x256xf32>
    %324 = arith.addf %321, %323 : vector<2x256xf32>
    %cst_145 = arith.constant 0.000000e+00 : f32
    %325 = vector.broadcast %cst_145 : f32 to vector<2x256xf32>
    %326 = arith.maximumf %324, %325 : vector<2x256xf32>
    %c0_146 = arith.constant 0 : index
    %c0_147 = arith.constant 0 : index
    %327 = vector.load %arg15[%c0_146, %c0_147] : memref<256x128xf32, #tpu.memory_space<vmem>>, vector<256x128xf32>
    %cst_148 = arith.constant dense<0.000000e+00> : vector<2x128xf32>
    %328 = tpu.matmul %326, %327, %cst_148 {dimension_numbers = #tpu.dot_dimension_numbers<[1], [0], [0], [1], [0, 0, 1, 1], [], []>} : vector<2x256xf32>, vector<256x128xf32>, vector<2x128xf32> -> vector<2x128xf32>
    %c0_149 = arith.constant 0 : index
    %c0_150 = arith.constant 0 : index
    %329 = vector.load %arg16[%c0_149, %c0_150] : memref<1x128xf32, #tpu.memory_space<vmem>>, vector<1x128xf32>
    %330 = vector.broadcast %329 : vector<1x128xf32> to vector<2x128xf32>
    %331 = arith.addf %328, %330 : vector<2x128xf32>
    %cst_151 = arith.constant 0.000000e+00 : f32
    %332 = vector.broadcast %cst_151 : f32 to vector<2x128xf32>
    %333 = arith.maximumf %331, %332 : vector<2x128xf32>
    %c0_152 = arith.constant 0 : index
    %c0_153 = arith.constant 0 : index
    %334 = vector.load %arg17[%c0_152, %c0_153] : memref<128x384xf32, #tpu.memory_space<vmem>>, vector<128x384xf32>
    %cst_154 = arith.constant dense<0.000000e+00> : vector<2x384xf32>
    %335 = tpu.matmul %333, %334, %cst_154 {dimension_numbers = #tpu.dot_dimension_numbers<[1], [0], [0], [1], [0, 0, 1, 1], [], []>} : vector<2x128xf32>, vector<128x384xf32>, vector<2x384xf32> -> vector<2x384xf32>
    %c0_155 = arith.constant 0 : index
    %c0_156 = arith.constant 0 : index
    %336 = vector.load %arg18[%c0_155, %c0_156] : memref<1x384xf32, #tpu.memory_space<vmem>>, vector<1x384xf32>
    %337 = vector.broadcast %336 : vector<1x384xf32> to vector<2x384xf32>
    %338 = arith.addf %335, %337 : vector<2x384xf32>
    %c0_157 = arith.constant 0 : index
    %c0_158 = arith.constant 0 : index
    %339 = vector.load %arg19[%c0_157, %c0_158] : memref<2x384xf32, #tpu.memory_space<vmem>>, vector<2x384xf32>
    tpu.vector_store %arg19[%c0_157, %c0_158], %338 {strides = array<i32>} : memref<2x384xf32, #tpu.memory_space<vmem>>, vector<2x384xf32>,
    %c0_159 = arith.constant 0 : index
    %c0_160 = arith.constant 0 : index
    %340 = vector.load %arg20[%c0_159, %c0_160] : memref<2x32xf32, #tpu.memory_space<vmem>>, vector<2x32xf32>
    tpu.vector_store %arg20[%c0_159, %c0_160], %319 {strides = array<i32>} : memref<2x32xf32, #tpu.memory_space<vmem>>, vector<2x32xf32>,
    return
  }
}

</mosaic_0001>

<bundles_post_ra>
// kernel: tpu_custom_call.1
= control target key start
LH: loop header
LB: loop body
LE: loop exit
PB: predicated region body
PF: predicated region fallthrough
CT: control target
= control target key end

     0   :  { %s5265_s0 = inlined_call_operand.hbm [shape: f32[16,32], index: 0, kind: input, shape index: {}]   ;;  %s5266_s1 = inlined_call_operand.hbm [shape: f32[16,16], index: 1, kind: input, shape index: {}]   ;;  %s5267_s2 = inlined_call_operand.hbm [shape: f32[2,16], index: 2, kind: input, shape index: {}]   ;;  %s5268_s3 = inlined_call_operand.vmem [shape: f32[2,32,96], index: 3, kind: input, shape index: {}]   ;;  %s5269_s4 = inlined_call_operand.vmem [shape: f32[2,32,32], index: 4, kind: input, shape index: {}]   ;;  %s5270_s5 = inlined_call_operand.vmem [shape: f32[2,1,32], index: 5, kind: input, shape index: {}]   ;;  %s5271_s6 = inlined_call_operand.vmem [shape: f32[2,1,32], index: 6, kind: input, shape index: {}]   ;;  %s5272_s7 = inlined_call_operand.vmem [shape: f32[2,32,64], index: 7, kind: input, shape index: {}]   ;;  %s5273_s8 = inlined_call_operand.vmem [shape: f32[2,1,64], index: 8, kind: input, shape index: {}]   ;;  %s5274_s9 = inlined_call_operand.vmem [shape: f32[2,64,32], index: 9, kind: input, shape index: {}]   ;;  %s5275_s10 = inlined_call_operand.vmem [shape: f32[2,1,32], index: 10, kind: input, shape index: {}]   ;;  %s5276_s11 = inlined_call_operand.vmem [shape: f32[2,1,32], index: 11, kind: input, shape index: {}]   ;;  %s5277_s12 = inlined_call_operand.vmem [shape: f32[2,1,32], index: 12, kind: input, shape index: {}]   ;;  %s5278_s13 = inlined_call_operand.hbm [shape: f32[32,256], index: 13, kind: input, shape index: {}]   ;;  %s5279_s14 = inlined_call_operand.vmem [shape: f32[1,256], index: 14, kind: input, shape index: {}]   ;;  %s5280_s15 = inlined_call_operand.hbm [shape: f32[256,128], index: 15, kind: input, shape index: {}]   ;;  %s5281_s16 = inlined_call_operand.vmem [shape: f32[1,128], index: 16, kind: input, shape index: {}]   ;;  %s5282_s17 = inlined_call_operand.hbm [shape: f32[128,384], index: 17, kind: input, shape index: {}]   ;;  %s5283_s18 = inlined_call_operand.vmem [shape: f32[1,384], index: 18, kind: input, shape index: {}]   ;;  %s5284_s19 = inlined_call_operand.hbm [shape: f32[2,384], index: 19, kind: output, shape index: {0}]   ;;  %s5285_s20 = inlined_call_operand.hbm [shape: f32[2,32], index: 20, kind: output, shape index: {1}]  }
   0x1   :  { %5292 = sst [smem:[#allocation22_spill]] %s5265_s0 }
   0x2   :  { %5293 = sst [smem:[#allocation23_spill]] %s5266_s1 }
   0x3   :  { %5294 = sst [smem:[#allocation24_spill]] %s5267_s2 }
   0x4   :  { %5295 = sst [smem:[#allocation25_spill]] %s5268_s3 }
   0x5   :  { %5296 = sst [smem:[#allocation26_spill]] %s5269_s4 }
   0x6   :  { %5297 = sst [smem:[#allocation27_spill]] %s5284_s19 }
   0x7   :  { %26 = vsyncpa [#allocation3], 0 }
   0x8   :  { %27 = vsyncpa [#allocation6], 0 }
   0x9   :  { %28 = vsyncpa [#allocation9], 0 }
   0xa   :  { %29 = vsyncpa [#allocation12], 0 }
   0xb   :  { %30 = vsyncpa [#allocation4], 0 }
   0xc   :  { %31 = vsyncpa [#allocation15], 0  ;;  %s4610_s1 = smov [#allocation5]   ;;  %s4611_s23 = smov [#allocation8]  }
   0xd   :  { %s49_s22 = sshll.u32 %s4610_s1, 4  ;;  %s91_s24 = sshll.u32 %s4611_s23, 4  ;;  %s50_s22 = int_to_ptr.vmem [resolvable:$true] %s49_s22  ;;  %s92_s24 = int_to_ptr.vmem [resolvable:$true] %s91_s24 }
   0xe   :  { %s4446_s2 = scalar_lea.vmem %s50_s22, 256  ;;  %p4451_p1 = scmp.lt.s32.totalorder %s50_s22, %s50_s22 }
   0xf   :  { %p4447_p0 = scmp.ne.s32.totalorder %s50_s22, %s4446_s2  ;;  %p4452_p2 = scmp.lt.s32.totalorder %s4446_s2, %s4446_s2 }
  0x11   :  { %p4453_p3 = por %p4452_p2, %p4451_p1 }
  0x13   :  { %p4454_p4 = pnand %p4453_p3, %p4447_p0 }
  0x15   :  { %4457 = shalt.err (!%p4454_p4)
}
  0x16   :  { %s4612_s25 = smov 128   ;;  %s4613_s3 = smov 8  }
  0x17   :  { %s5298_s28 = sld [smem:[#allocation23_spill]]  ;;  %s4466_s4 = scalar_lea.vmem %s92_s24, 1024 }
  0x18   :  { %p4467_p5 = scmp.ne.s32.totalorder %s92_s24, %s4466_s4  ;;  %p4471_p6 = scmp.lt.s32.totalorder %s92_s24, %s92_s24 }
  0x19   :  { %p4472_p7 = scmp.lt.s32.totalorder %s4466_s4, %s4466_s4 }
  0x1b   :  { %p4473_p8 = por %p4472_p7, %p4471_p6 }
  0x1d   :  { %55 = dma.hbm_to_vmem [thread:$0]  %s5298_s28, 256, %s50_s22, [#allocation6], %s4612_s25, %s4612_s25, %s4613_s3  }
  0x1e   :  { %p4474_p9 = pnand %p4473_p8, %p4467_p5 }
  0x20   :  { %4477 = shalt.err (!%p4474_p9)
}
  0x21   :  { %s4614_s29 = smov 256   ;;  %s4615_s30 = smov 16  }
  0x22   :  { %97 = dma.hbm_to_vmem [thread:$0]  %s5278_s13, 1024, %s92_s24, [#allocation9], %s4614_s29, %s4614_s29, %s4615_s30  }
  0x23   :  { %s4616_s1 = smov [#allocation2]   ;;  %s4617_s2 = smov [#allocation7]  }
  0x24   :  { %s37_s23 = sshll.u32 %s4616_s1, 4  ;;  %s62_s19 = sshll.u32 %s4617_s2, 4  ;;  %s38_s23 = int_to_ptr.vmem [resolvable:$true] %s37_s23  ;;  %s63_s19 = int_to_ptr.vmem [resolvable:$true] %s62_s19 }
  0x25   :  { %s4486_s22 = scalar_lea.vmem %s38_s23, 256  ;;  %p4491_p11 = scmp.lt.s32.totalorder %s38_s23, %s38_s23 }
  0x26   :  { %p4487_p10 = scmp.ne.s32.totalorder %s38_s23, %s4486_s22  ;;  %p4492_p12 = scmp.lt.s32.totalorder %s4486_s22, %s4486_s22 }
  0x28   :  { %p4493_p13 = por %p4492_p12, %p4491_p11 }
  0x2a   :  { %p4494_p0 = pnand %p4493_p13, %p4487_p10 }
  0x2c   :  { %4497 = shalt.err (!%p4494_p0)
}
  0x2d   :  { %s5299_s28 = sld [smem:[#allocation22_spill]]  ;;  %s4506_s13 = scalar_lea.vmem %s63_s19, 32 }
  0x2e   :  { %p4507_p1 = scmp.ne.s32.totalorder %s63_s19, %s4506_s13  ;;  %p4511_p2 = scmp.lt.s32.totalorder %s63_s19, %s63_s19 }
  0x2f   :  { %p4512_p3 = scmp.lt.s32.totalorder %s4506_s13, %s4506_s13 }
  0x31   :  { %p4513_p4 = por %p4512_p3, %p4511_p2 }
  0x33   :  { %43 = dma.hbm_to_vmem [thread:$0]  %s5299_s28, 256, %s38_s23, [#allocation3], %s4612_s25, %s4612_s25, %s4613_s3  }
  0x34   :  { %p4514_p5 = pnand %p4513_p4, %p4507_p1 }
  0x36   :  { %4517 = shalt.err (!%p4514_p5)
}
  0x37   :  { %s5300_s29 = sld [smem:[#allocation24_spill]]  ;;  %s4618_s30 = smov [#allocation10]  }
  0x38   :  { %s105_s0 = sshll.u32 %s4618_s30, 4  ;;  %s4619_s21 = smov [#allocation11]   ;;  %s106_s0 = int_to_ptr.vmem [resolvable:$true] %s105_s0 }
  0x39   :  { %s119_s1 = sshll.u32 %s4619_s21, 4  ;;  %s4526_s2 = scalar_lea.vmem %s106_s0, 4096  ;;  %s120_s1 = int_to_ptr.vmem [resolvable:$true] %s119_s1 }
  0x3a   :  { %p4527_p6 = scmp.ne.s32.totalorder %s106_s0, %s4526_s2  ;;  %p4531_p7 = scmp.lt.s32.totalorder %s106_s0, %s106_s0 }
  0x3b   :  { %p4532_p8 = scmp.lt.s32.totalorder %s4526_s2, %s4526_s2 }
  0x3d   :  { %65 = dma.hbm_to_vmem [thread:$0]  %s5300_s29, 32, %s63_s19, [#allocation6]  }
  0x3e   :  { %p4533_p9 = por %p4532_p8, %p4531_p7 }
  0x40   :  { %p4534_p10 = pnand %p4533_p9, %p4527_p6 }
  0x42   :  { %4537 = shalt.err (!%p4534_p10)
}
  0x43   :  { %111 = dma.hbm_to_vmem [thread:$0]  %s5280_s15, 4096, %s106_s0, [#allocation9], %s4612_s25, %s4612_s25, %s4613_s3  }
  0x44   :  { %s4546_s19 = scalar_lea.vmem %s120_s1, 6144  ;;  %p4551_p12 = scmp.lt.s32.totalorder %s120_s1, %s120_s1 }
  0x45   :  { %p4547_p11 = scmp.ne.s32.totalorder %s120_s1, %s4546_s19  ;;  %p4552_p13 = scmp.lt.s32.totalorder %s4546_s19, %s4546_s19 }
  0x47   :  { %p4553_p0 = por %p4552_p13, %p4551_p12 }
  0x49   :  { %p4554_p1 = pnand %p4553_p0, %p4547_p11 }
  0x4b   :  { %4557 = shalt.err (!%p4554_p1)
}
  0x4c   :  { %s4620_s26 = smov 384   ;;  %s4621_s27 = smov 24  }
  0x4d   :  { %125 = dma.hbm_to_vmem [thread:$0]  %s5282_s17, 6144, %s120_s1, [#allocation12], %s4620_s26, %s4620_s26, %s4621_s27  }
  0x4e   :  { %4598 = dma.done.wait [#allocation3], 256  }
  0x4f   :  { %4599 = vsyncadd [#allocation3], 4294967040 }
  0x50   :  { %4600 = dma.done.wait [#allocation6], 288  }
  0x51   :  { %4601 = vsyncadd [#allocation6], 4294967008 }
  0x52   :  { %4602 = dma.done.wait [#allocation9], 5120  }
  0x53   :  { %4603 = vsyncadd [#allocation9], 4294962176 }
  0x54   :  { %4604 = dma.done.wait [#allocation12], 6144  }
  0x55   :  { %4605 = vsyncadd [#allocation12], 4294961152  ;;  %vm154_vm0 = vcmask 261120   ;;  %s5301_s3 = sld [smem:[#allocation25_spill]]  ;;  %v4776_v2 = vld [vmem:[#allocation2] sm:$0xff]  ;;  %v4786_v5 = vld [vmem:[#allocation2 + $0x8] sm:$0xff] }
  0x56   :  { %4060 = vmatprep.mubr.msk.f32.mxu0 %vm154_vm0, %v4776_v2  ;;  %vm246_vm1 = vcmask 64512   ;;  %s4622_s21 = smov 88   ;;  %s4623_s1 = smov 96   ;;  %v4820_v15 = vld [vmem:[#allocation5 + $0x8] sm:$0xff]  ;;  %vm334_vm2 = vcmask 130048   ;;  %v4822_v18 = vld [vmem:[#allocation5] sm:$0xff] }
  0x57   :  { %s4624_s2 = smov 120   ;;  %s4625_s23 = smov 64   ;;  %vm1544_vm3 = vcmask 523264   ;;  %vm4634_vm4 = vmmov 0   ;;  %vm3714_vm5 = vcmask 254976  }
  0x58   :  { %s4626_s22 = smov 56   ;;  %s4627_s19 = smov 80  }
  0x59   :  { %s4628_s26 = smov 112   ;;  %s4629_s27 = smov 72  }
  0x5a   :  { %s4630_s28 = smov 104   ;;  %s5302_s25 = sld [smem:[#allocation26_spill]] }
  0x5b   :  { %v153_v0 = vld [vmem:[%s5301_s3 + $0x18] sm:$0xff]  ;;  %v152_v1 = vld [vmem:[%s5301_s3 + $0x10] sm:$0xff]  ;;  %v151_v3 = vld [vmem:[%s5301_s3 + $0x8] sm:$0xff]  ;;  %s5290_s17 = smov 48   ;;  %s5288_s29 = smov 40  }
  0x5c   :  { %4052 = vmatprep.subr.mxu0 %v153_v0  ;;  %v150_v4 = vld [vmem:[%s5301_s3] sm:$0xff] }
  0x5d   :  { %4053 = vmatpush3.msra.mxu0 %v153_v0 }
  0x5e   :  { %4054 = vmatprep.subr.mxu0 %v152_v1 }
  0x5f   :  { %4055 = vmatpush3.msra.mxu0 %v152_v1 }
  0x60   :  { %4056 = vmatprep.subr.mxu0 %v151_v3  ;;  %v237_v0 = vld [vmem:[%s5302_s25 + $0x8] sm:$0xff] }
  0x61   :  { %4057 = vmatpush3.msra.mxu0 %v151_v3 }
  0x62   :  { %4058 = vmatprep.subr.mxu0 %v150_v4 }
  0x63   :  { %4059 = vmatpush3.msra.mxu0 %v150_v4 }
  0x64   :  { %4061 = vmatmul.mubr.msk.f32.vlgmr.msra.gmra.mxu0 %vm154_vm0, %v4786_v5 }
 0x124   :  { %v4790_v6 = vpop.f32.mrf.mxu0 }
 0x125   :  { %450 = vrot.lane.b32.xlu1 %v4790_v6, %s4622_s21  ;;  %244 = vrot.lane.b32.xlu0 %v4790_v6, %s4623_s1 }
 0x126   :  { %v4796_v7 = vpop.f32.mrf.mxu0 }
 0x127   :  { %4067 = vmatprep.mubr.msk.f32.mxu1 %vm246_vm1, %v4796_v7 }
 0x129   :  { %448 = vrot.lane.b32.xlu1 %v4796_v7, %s4622_s21  ;;  %242 = vrot.lane.b32.xlu0 %v4796_v7, %s4623_s1 }
 0x12d   :  { %446 = vrot.lane.b32.xlu1 %v4790_v6, %s4624_s2  ;;  %444 = vrot.lane.b32.xlu0 %v4796_v7, %s4624_s2 }
 0x197   :  { %v245_v8 = vpop.permute.xlu0 %244  ;;  %v451_v9 = vpop.permute.xlu1 %450 }
 0x198   :  { %4063 = vmatprep.subr.msk.mxu1 %vm246_vm1, %v245_v8 }
 0x199   :  { %4064 = vmatpush3.xpose.msk.msra.mxu1 %vm246_vm1, %v245_v8 }
 0x19b   :  { %v243_v10 = vpop.permute.xlu0 %242  ;;  %v449_v12 = vpop.permute.xlu1 %448 }
 0x19c   :  { %4065 = vmatprep.subr.msk.mxu1 %vm246_vm1, %v243_v10 }
 0x19d   :  { %4066 = vmatpush3.xpose.msk.msra.mxu1 %vm246_vm1, %v243_v10  ;;  %v236_v10 = vld [vmem:[%s5302_s25] sm:$0xff] }
 0x19e   :  { %4077 = vmatprep.subr.msk.mxu1 %vm246_vm1, %v451_v9 }
 0x19f   :  { %v445_v11 = vpop.permute.xlu0 %444  ;;  %v447_v13 = vpop.permute.xlu1 %446 }
 0x1a0   :  { %4068 = vmatmul.mubr.msk.f32.vlgmr.msra.gmra.mxu1 %vm246_vm1, %v4790_v6 }
 0x1a1   :  { %4078 = vmatpush3.xpose.msk.msra.mxu1 %vm246_vm1, %v451_v9  ;;  %4081 = vmatprep.mubr.msk.f32.mxu1 %vm246_vm1, %v445_v11 }
 0x1a2   :  { %4079 = vmatprep.subr.msk.mxu1 %vm246_vm1, %v449_v12 }
 0x1a5   :  { %4080 = vmatpush3.xpose.msk.msra.mxu1 %vm246_vm1, %v449_v12 }
 0x1a6   :  { %4096 = vmatprep.subr.mxu1 %v236_v10 }
 0x1a8   :  { %4082 = vmatmul.mubr.msk.f32.vlgmr.msra.gmra.mxu1 %vm246_vm1, %v447_v13 }
 0x1a9   :  { %4097 = vmatpush3.msra.mxu1 %v236_v10 }
 0x260   :  { %v4069_v14 = vpop.f32.mrf.mxu1 }
 0x261   :  { %v331_v16 = vmul.f32 0.35355338, %v4069_v14 }
 0x262   :  { %v321_v17 = vpop.f32.mrf.mxu1 }
 0x263   :  { %v330_v19 = vmul.f32 0.35355338, %v321_v17  ;;  %v333_v20 = vadd.f32 %v331_v16, %v4820_v15 }
 0x265   :  { %v338_v21 = vsel %vm334_vm2, %v333_v20, -inf  ;;  %v332_v22 = vadd.f32 %v330_v19, %v4822_v18 }
 0x266   :  { %339 = vmax.xlane.f32.xlu1 %v338_v21 }
 0x267   :  { %v335_v23 = vsel %vm334_vm2, %v332_v22, -inf }
 0x268   :  { %v4083_v24 = vpop.f32.mrf.mxu1  ;;  %336 = vmax.xlane.f32.xlu0 %v335_v23 }
 0x269   :  { %v536_v26 = vmul.f32 0.35355338, %v4083_v24 }
 0x26a   :  { %v526_v25 = vpop.f32.mrf.mxu1 }
 0x26b   :  { %v535_v27 = vmul.f32 0.35355338, %v526_v25  ;;  %v538_v30 = vadd.f32 %v536_v26, %v4820_v15 }
 0x26d   :  { %v537_v28 = vadd.f32 %v535_v27, %v4822_v18  ;;  %v542_v31 = vsel %vm334_vm2, %v538_v30, -inf }
 0x26f   :  { %v539_v29 = vsel %vm334_vm2, %v537_v28, -inf }
 0x270   :  { %540 = vmax.xlane.f32.xlu0 %v539_v29 }
 0x274   :  { %543 = vmax.xlane.f32.xlu0 %v542_v31 }
 0x277   :  { %359 = vrot.lane.b32.xlu1 %v4790_v6, %s4625_s23 }
 0x2ef   :  { %v340_v32 = vpop.xlane.xlu1 %339 }
 0x2f0   :  { %v342_v33 = vsub.f32 %v333_v20, %v340_v32 }
 0x2f1   :  { %v337_v34 = vpop.xlane.xlu0 %336 }
 0x2f2   :  { %v345_v35 = vmul.f32 1.442695, %v342_v33  ;;  %v341_v36 = vsub.f32 %v332_v22, %v337_v34 }
 0x2f3   :  { %v360_v37 = vpop.permute.xlu1 %359 }
 0x2f4   :  { %4356 = vpow2.f32 %v345_v35  ;;  %v343_v38 = vmul.f32 1.442695, %v341_v36  ;;  %4070 = vmatprep.subr.mxu0 %v360_v37 }
 0x2f5   :  { %4071 = vmatpush3.msra.mxu0 %v360_v37 }
 0x2f6   :  { %4358 = vpow2.f32 %v343_v38 }
 0x2f9   :  { %v541_v39 = vpop.xlane.xlu0 %540 }
 0x2fa   :  { %v545_v49 = vsub.f32 %v537_v28, %v541_v39 }
 0x2fc   :  { %v547_v50 = vmul.f32 1.442695, %v545_v49 }
 0x2fd   :  { %v544_v40 = vpop.xlane.xlu0 %543 }
 0x2fe   :  { %v546_v41 = vsub.f32 %v538_v30, %v544_v40 }
 0x300   :  { %v549_v42 = vmul.f32 1.442695, %v546_v41 }
 0x301   :  { %v4357_v43 = vpop.eup %4356 }
 0x302   :  { %4360 = vpow2.f32 %v549_v42  ;;  %v350_v44 = vsel %vm334_vm2, %v4357_v43, 0.0 }
 0x303   :  { %v4359_v45 = vpop.eup %4358  ;;  %351 = vadd.xlane.f32.xlu0 %v350_v44  ;;  %4362 = vpow2.f32 %v547_v50 }
 0x304   :  { %v347_v46 = vsel %vm334_vm2, %v4359_v45, 0.0 }
 0x305   :  { %348 = vadd.xlane.f32.xlu1 %v347_v46 }
 0x30f   :  { %v4361_v47 = vpop.eup %4360 }
 0x310   :  { %v554_v48 = vsel %vm334_vm2, %v4361_v47, 0.0  ;;  %v4363_v51 = vpop.eup %4362 }
 0x311   :  { %555 = vadd.xlane.f32.xlu0 %v554_v48  ;;  %v551_v52 = vsel %vm334_vm2, %v4363_v51, 0.0 }
 0x316   :  { %563 = vrot.lane.b32.xlu1 %v4790_v6, %s4626_s22 }
 0x327   :  { %357 = vrot.lane.b32.xlu0 %v4796_v7, %s4625_s23 }
 0x32b   :  { %816 = vrot.lane.b32.xlu0 %v4790_v6, %s4627_s19 }
 0x32f   :  { %810 = vrot.lane.b32.xlu0 %v4796_v7, %s4628_s26 }
 0x333   :  { %1103 = vrot.lane.b32.xlu0 %v4790_v6, %s4629_s27 }
 0x337   :  { %1097 = vrot.lane.b32.xlu0 %v4796_v7, %s4630_s28 }
 0x33a   :  { %552 = vadd.xlane.f32.xlu1 %v551_v52 }
 0x34b   :  { %561 = vrot.lane.b32.xlu1 %v4796_v7, %s4626_s22 }
 0x34f   :  { %814 = vrot.lane.b32.xlu1 %v4796_v7, %s4627_s19 }
 0x353   :  { %812 = vrot.lane.b32.xlu1 %v4790_v6, %s4628_s26 }
 0x357   :  { %1101 = vrot.lane.b32.xlu1 %v4796_v7, %s4629_s27 }
 0x35b   :  { %1099 = vrot.lane.b32.xlu1 %v4790_v6, %s4630_s28 }
 0x38c   :  { %v352_v53 = vpop.xlane.xlu0 %351 }
 0x38d   :  { %4364 = vrcp.f32 %v352_v53 }
 0x38e   :  { %v349_v54 = vpop.xlane.xlu1 %348 }
 0x38f   :  { %4366 = vrcp.f32 %v349_v54 }
 0x392   :  { %v564_v61 = vpop.permute.xlu1 %563 }
 0x39a   :  { %v556_v55 = vpop.xlane.xlu0 %555  ;;  %v4365_v56 = vpop.eup %4364 }
 0x39b   :  { %v356_v60 = vmul.f32 %v4365_v56, %v4357_v43  ;;  %4368 = vrcp.f32 %v556_v55 }
 0x39c   :  { %v4367_v57 = vpop.eup %4366 }
 0x39d   :  { %v355_v58 = vmul.f32 %v4367_v57, %v4359_v45 }
 0x39e   :  { %v358_v59 = vpop.permute.xlu0 %357 }
 0x39f   :  { %4072 = vmatprep.subr.mxu0 %v358_v59  ;;  %4074 = vmatprep.mubr.msk.f32.mxu0 %vm334_vm2, %v355_v58 }
 0x3a0   :  { %4073 = vmatpush3.msra.mxu0 %v358_v59 }
 0x3a1   :  { %4075 = vmatmul.mubr.msk.f32.vlgmr.msra.gmra.mxu0 %vm334_vm2, %v356_v60  ;;  %4084 = vmatprep.subr.mxu0 %v564_v61 }
 0x3a2   :  { %4085 = vmatpush3.msra.mxu0 %v564_v61  ;;  %v817_v9 = vpop.permute.xlu0 %816 }
 0x3a6   :  { %v811_v13 = vpop.permute.xlu0 %810 }
 0x3a8   :  { %v4369_v1 = vpop.eup %4368 }
 0x3a9   :  { %v560_v8 = vmul.f32 %v4369_v1, %v4361_v47 }
 0x3aa   :  { %v1104_v19 = vpop.permute.xlu0 %1103 }
 0x3ae   :  { %v1098_v21 = vpop.permute.xlu0 %1097 }
 0x3c3   :  { %v553_v62 = vpop.xlane.xlu1 %552 }
 0x3c4   :  { %4370 = vrcp.f32 %v553_v62 }
 0x3c7   :  { %v562_v63 = vpop.permute.xlu1 %561 }
 0x3c8   :  { %4086 = vmatprep.subr.mxu0 %v562_v63 }
 0x3c9   :  { %4087 = vmatpush3.msra.mxu0 %v562_v63  ;;  %v238_v63 = vld [vmem:[%s5302_s25 + $0x10] sm:$0xff] }
 0x3ca   :  { %4091 = vmatprep.subr.mxu0 %v237_v0 }
 0x3cb   :  { %v815_v16 = vpop.permute.xlu1 %814 }
 0x3cf   :  { %v813_v20 = vpop.permute.xlu1 %812 }
 0x3d1   :  { %v4371_v3 = vpop.eup %4370 }
 0x3d2   :  { %v559_v4 = vmul.f32 %v4371_v3, %v4363_v51 }
 0x3d3   :  { %v1102_v22 = vpop.permute.xlu1 %1101 }
 0x3d4   :  { %4088 = vmatprep.mubr.msk.f32.mxu0 %vm334_vm2, %v559_v4 }
 0x3d5   :  { %4089 = vmatmul.mubr.msk.f32.vlgmr.msra.gmra.mxu0 %vm334_vm2, %v560_v8 }
 0x3d6   :  { %4092 = vmatpush3.msra.mxu0 %v237_v0 }
 0x3d7   :  { %4101 = vmatprep.subr.msk.mxu0 %vm246_vm1, %v817_v9  ;;  %v1100_v23 = vpop.permute.xlu1 %1099 }
 0x461   :  { %v4076_v11 = vpop.f32.mrf.mxu0 }
 0x463   :  { %v435_v12 = vpop.f32.mrf.mxu0 }
 0x464   :  { %4098 = vmatprep.mubr.msk.f32.mxu1 %vm246_vm1, %v435_v12 }
 0x465   :  { %4099 = vmatmul.mubr.msk.f32.vlgmr.msra.gmra.mxu1 %vm246_vm1, %v4076_v11 }
 0x495   :  { %v4090_v14 = vpop.f32.mrf.mxu0 }
 0x497   :  { %v639_v17 = vpop.f32.mrf.mxu0 }
 0x498   :  { %4093 = vmatprep.mubr.msk.f32.mxu0 %vm246_vm1, %v639_v17 }
 0x499   :  { %4094 = vmatmul.mubr.msk.f32.vlgmr.msra.gmra.mxu0 %vm246_vm1, %v4090_v14 }
 0x49a   :  { %4102 = vmatpush3.xpose.msk.msra.mxu0 %vm246_vm1, %v817_v9  ;;  %4105 = vmatprep.mubr.msk.f32.mxu0 %vm246_vm1, %v811_v13 }
 0x49b   :  { %4103 = vmatprep.subr.msk.mxu0 %vm246_vm1, %v815_v16 }
 0x49e   :  { %4104 = vmatpush3.xpose.msk.msra.mxu0 %vm246_vm1, %v815_v16 }
 0x49f   :  { %4120 = vmatprep.subr.msk.mxu0 %vm246_vm1, %v1104_v19 }
 0x4a1   :  { %4106 = vmatmul.mubr.msk.f32.vlgmr.msra.gmra.mxu0 %vm246_vm1, %v813_v20 }
 0x4a2   :  { %4121 = vmatpush3.xpose.msk.msra.mxu0 %vm246_vm1, %v1104_v19  ;;  %4124 = vmatprep.mubr.msk.f32.mxu0 %vm246_vm1, %v1098_v21 }
 0x4a3   :  { %4122 = vmatprep.subr.msk.mxu0 %vm246_vm1, %v1102_v22 }
 0x4a6   :  { %4123 = vmatpush3.xpose.msk.msra.mxu0 %vm246_vm1, %v1102_v22 }
 0x4a9   :  { %4125 = vmatmul.mubr.msk.f32.vlgmr.msra.gmra.mxu0 %vm246_vm1, %v1100_v23 }
 0x525   :  { %v4100_v24 = vpop.f32.mrf.mxu1 }
 0x527   :  { %v801_v14 = vpop.f32.mrf.mxu1 }
 0x559   :  { %v4095_v25 = vpop.f32.mrf.mxu0 }
 0x55a   :  { %v4886_v26 = vadd.f32 %v4100_v24, %v4095_v25  ;;  %v239_v24 = vld [vmem:[%s5302_s25 + $0x18] sm:$0xff] }
 0x55b   :  { %v4888_v27 = vpop.f32.mrf.mxu0 }
 0x561   :  { %v4107_v28 = vpop.f32.mrf.mxu0 }
 0x562   :  { %v902_v29 = vmul.f32 0.35355338, %v4107_v28  ;;  %v802_v28 = vadd.f32 %v801_v14, %v4888_v27  ;;  %v1533_v14 = vld [vmem:[%s5274_s9 + $0x20] sm:$0xff] }
 0x563   :  { %v892_v30 = vpop.f32.mrf.mxu0 }
 0x564   :  { %v901_v31 = vmul.f32 0.35355338, %v892_v30  ;;  %v904_v32 = vadd.f32 %v902_v29, %v4820_v15 }
 0x566   :  { %v908_v33 = vsel %vm334_vm2, %v904_v32, -inf  ;;  %v903_v34 = vadd.f32 %v901_v31, %v4822_v18 }
 0x567   :  { %909 = vmax.xlane.f32.xlu1 %v908_v33 }
 0x568   :  { %v905_v35 = vsel %vm334_vm2, %v903_v34, -inf }
 0x569   :  { %906 = vmax.xlane.f32.xlu0 %v905_v35  ;;  %v4126_v36 = vpop.f32.mrf.mxu0 }
 0x56a   :  { %v1189_v55 = vmul.f32 0.35355338, %v4126_v36 }
 0x56b   :  { %v1179_v37 = vpop.f32.mrf.mxu0 }
 0x56c   :  { %v1188_v38 = vmul.f32 0.35355338, %v1179_v37  ;;  %v1191_v58 = vadd.f32 %v1189_v55, %v4820_v15 }
 0x56e   :  { %v1190_v39 = vadd.f32 %v1188_v38, %v4822_v18  ;;  %v1195_v59 = vsel %vm334_vm2, %v1191_v58, -inf }
 0x570   :  { %v1192_v40 = vsel %vm334_vm2, %v1190_v39, -inf }
 0x578   :  { %929 = vrot.lane.b32.xlu1 %v4790_v6, %s5290_s17 }
 0x59c   :  { %1193 = vmax.xlane.f32.xlu1 %v1192_v40 }
 0x5f0   :  { %v910_v41 = vpop.xlane.xlu1 %909 }
 0x5f1   :  { %v912_v42 = vsub.f32 %v904_v32, %v910_v41 }
 0x5f2   :  { %v907_v43 = vpop.xlane.xlu0 %906 }
 0x5f3   :  { %v915_v44 = vmul.f32 1.442695, %v912_v42  ;;  %v911_v45 = vsub.f32 %v903_v34, %v907_v43 }
 0x5f4   :  { %v930_v46 = vpop.permute.xlu1 %929 }
 0x5f5   :  { %4372 = vpow2.f32 %v915_v44  ;;  %v913_v47 = vmul.f32 1.442695, %v911_v45  ;;  %4108 = vmatprep.subr.mxu1 %v930_v46  ;;  %v1436_v44 = vld [vmem:[%s5272_s7 + $0x8] sm:$0xff]  ;;  %v1435_v45 = vld [vmem:[%s5272_s7] sm:$0xff] }
 0x5f6   :  { %4109 = vmatpush3.msra.mxu1 %v930_v46  ;;  %v1536_v46 = vld [vmem:[%s5274_s9 + $0x38] sm:$0xff] }
 0x5f7   :  { %4374 = vpow2.f32 %v913_v47 }
 0x602   :  { %v4373_v48 = vpop.eup %4372 }
 0x603   :  { %v920_v49 = vsel %vm334_vm2, %v4373_v48, 0.0 }
 0x604   :  { %v4375_v50 = vpop.eup %4374  ;;  %921 = vadd.xlane.f32.xlu0 %v920_v49 }
 0x605   :  { %v917_v51 = vsel %vm334_vm2, %v4375_v50, 0.0 }
 0x608   :  { %918 = vadd.xlane.f32.xlu0 %v917_v51 }
 0x61e   :  { %927 = vrot.lane.b32.xlu0 %v4796_v7, %s5290_s17 }
 0x625   :  { %v1194_v52 = vpop.xlane.xlu1 %1193 }
 0x626   :  { %v1198_v53 = vsub.f32 %v1190_v39, %v1194_v52 }
 0x628   :  { %v1200_v54 = vmul.f32 1.442695, %v1198_v53 }
 0x62a   :  { %4376 = vpow2.f32 %v1200_v54 }
 0x637   :  { %v4377_v56 = vpop.eup %4376 }
 0x638   :  { %v1204_v57 = vsel %vm334_vm2, %v4377_v56, 0.0 }
 0x639   :  { %1205 = vadd.xlane.f32.xlu1 %v1204_v57 }
 0x63d   :  { %1196 = vmax.xlane.f32.xlu0 %v1195_v59 }
 0x64a   :  { %1216 = vrot.lane.b32.xlu1 %v4790_v6, %s5288_s29 }
 0x68d   :  { %v922_v60 = vpop.xlane.xlu0 %921 }
 0x68e   :  { %4378 = vrcp.f32 %v922_v60 }
 0x691   :  { %v919_v61 = vpop.xlane.xlu0 %918 }
 0x692   :  { %4380 = vrcp.f32 %v919_v61 }
 0x695   :  { %v928_v62 = vpop.permute.xlu0 %927 }
 0x696   :  { %4110 = vmatprep.subr.mxu1 %v928_v62 }
 0x697   :  { %4111 = vmatpush3.msra.mxu1 %v928_v62 }
 0x698   :  { %4115 = vmatprep.subr.mxu1 %v238_v63 }
 0x69b   :  { %v4379_v0 = vpop.eup %4378 }
 0x69c   :  { %v926_v4 = vmul.f32 %v4379_v0, %v4373_v48  ;;  %v3782_v0 = vld [vmem:[%s5270_s5] ss:$0 sm:$0xff] }
 0x69f   :  { %v4381_v1 = vpop.eup %4380 }
 0x6a0   :  { %v925_v3 = vmul.f32 %v4381_v1, %v4375_v50 }
 0x6a2   :  { %4112 = vmatprep.mubr.msk.f32.mxu1 %vm334_vm2, %v925_v3 }
 0x6a3   :  { %4113 = vmatmul.mubr.msk.f32.vlgmr.msra.gmra.mxu1 %vm334_vm2, %v926_v4 }
 0x6a4   :  { %4116 = vmatpush3.msra.mxu1 %v238_v63 }
 0x6c2   :  { %v1206_v6 = vpop.xlane.xlu1 %1205 }
 0x6c6   :  { %v1217_v8 = vpop.permute.xlu1 %1216  ;;  %v1197_v9 = vpop.xlane.xlu0 %1196 }
 0x6c7   :  { %v1199_v10 = vsub.f32 %v1191_v58, %v1197_v9  ;;  %4127 = vmatprep.subr.mxu1 %v1217_v8 }
 0x6c9   :  { %v1202_v11 = vmul.f32 1.442695, %v1199_v10 }
 0x6cb   :  { %4382 = vpow2.f32 %v1202_v11 }
 0x6cc   :  { %4384 = vrcp.f32 %v1206_v6 }
 0x6d8   :  { %v4383_v12 = vpop.eup %4382 }
 0x6d9   :  { %v1207_v13 = vsel %vm334_vm2, %v4383_v12, 0.0  ;;  %v4385_v16 = vpop.eup %4384 }
 0x6da   :  { %1208 = vadd.xlane.f32.xlu0 %v1207_v13  ;;  %v1212_v21 = vmul.f32 %v4385_v16, %v4377_v56  ;;  %v1534_v13 = vld [vmem:[%s5274_s9 + $0x28] sm:$0xff]  ;;  %v1532_v16 = vld [vmem:[%s5274_s9 + $0x18] sm:$0xff] }
 0x6f0   :  { %1214 = vrot.lane.b32.xlu0 %v4796_v7, %s5288_s29 }
 0x763   :  { %v4114_v17 = vpop.f32.mrf.mxu1  ;;  %v1209_v19 = vpop.xlane.xlu0 %1208 }
 0x764   :  { %4386 = vrcp.f32 %v1209_v19  ;;  %v1530_v19 = vld [vmem:[%s5274_s9 + $0x8] sm:$0xff] }
 0x765   :  { %v1005_v20 = vpop.f32.mrf.mxu1 }
 0x766   :  { %4117 = vmatprep.mubr.msk.f32.mxu1 %vm246_vm1, %v1005_v20  ;;  %v1529_v20 = vld [vmem:[%s5274_s9] sm:$0xff] }
 0x767   :  { %4118 = vmatmul.mubr.msk.f32.vlgmr.msra.gmra.mxu1 %vm246_vm1, %v4114_v17  ;;  %v1215_v22 = vpop.permute.xlu0 %1214  ;;  %v1531_v17 = vld [vmem:[%s5274_s9 + $0x10] sm:$0xff] }
 0x768   :  { %4128 = vmatpush3.msra.mxu1 %v1217_v8  ;;  %4131 = vmatprep.mubr.msk.f32.mxu1 %vm334_vm2, %v1212_v21  ;;  %v3783_v8 = vld [vmem:[%s5271_s6] ss:$0 sm:$0xff] }
 0x769   :  { %4129 = vmatprep.subr.mxu1 %v1215_v22  ;;  %v3784_v21 = vld [vmem:[%s5273_s8] ss:$0 sm:$0xff] }
 0x76a   :  { %4130 = vmatpush3.msra.mxu1 %v1215_v22 }
 0x76b   :  { %4134 = vmatprep.subr.mxu1 %v239_v24 }
 0x771   :  { %v4387_v23 = vpop.eup %4386 }
 0x772   :  { %v1213_v7 = vmul.f32 %v4387_v23, %v4383_v12  ;;  %v1535_v12 = vld [vmem:[%s5274_s9 + $0x30] sm:$0xff] }
 0x774   :  { %4132 = vmatmul.mubr.msk.f32.vlgmr.msra.gmra.mxu1 %vm334_vm2, %v1213_v7 }
 0x775   :  { %4135 = vmatpush3.msra.mxu1 %v239_v24 }
 0x827   :  { %v4119_v25 = vpop.f32.mrf.mxu1 }
 0x828   :  { %v1096_v29 = vadd.f32 %v4119_v25, %v4886_v26 }
 0x829   :  { %v1086_v30 = vpop.f32.mrf.mxu1 }
 0x82a   :  { %v1095_v31 = vadd.f32 %v1086_v30, %v802_v28 }
 0x834   :  { %v4133_v32 = vpop.f32.mrf.mxu1 }
 0x836   :  { %v1292_v33 = vpop.f32.mrf.mxu1 }
 0x837   :  { %4136 = vmatprep.mubr.msk.f32.mxu1 %vm246_vm1, %v1292_v33 }
 0x838   :  { %4137 = vmatmul.mubr.msk.f32.vlgmr.msra.gmra.mxu1 %vm246_vm1, %v4133_v32 }
 0x8f8   :  { %v4138_v34 = vpop.f32.mrf.mxu1 }
 0x8f9   :  { %v1383_v35 = vadd.f32 %v4138_v34, %v1096_v29  ;;  %v3787_v29 = vld [vmem:[%s5275_s10] ss:$0 sm:$0xff] }
 0x8fa   :  { %v1373_v36 = vpop.f32.mrf.mxu1 }
 0x8fb   :  { %v1385_v37 = vadd.f32 %v1383_v35, %v4786_v5  ;;  %v1382_v38 = vadd.f32 %v1373_v36, %v1095_v31  ;;  %v1438_v5 = vld [vmem:[%s5272_s7 + $0x18] sm:$0xff] }
 0x8fc   :  { %4139 = vmatprep.subr.mxu0 %v1438_v5 }
 0x8fd   :  { %v1384_v39 = vadd.f32 %v1382_v38, %v4776_v2  ;;  %v1391_v27 = vsel %vm154_vm0, %v1385_v37, 0.0  ;;  %v1398_v40 = vmul.f32 %v1385_v37, %v1385_v37  ;;  %v1437_v2 = vld [vmem:[%s5272_s7 + $0x10] sm:$0xff]  ;;  %4140 = vmatpush3.msra.mxu0 %v1438_v5 }
 0x8fe   :  { %1392 = vadd.xlane.f32.xlu0 %v1391_v27  ;;  %4141 = vmatprep.subr.mxu0 %v1437_v2 }
 0x8ff   :  { %v1388_v26 = vsel %vm154_vm0, %v1384_v39, 0.0  ;;  %v1397_v41 = vmul.f32 %v1384_v39, %v1384_v39  ;;  %v1402_v42 = vsel %vm154_vm0, %v1398_v40, 0.0  ;;  %4142 = vmatpush3.msra.mxu0 %v1437_v2 }
 0x900   :  { %1389 = vadd.xlane.f32.xlu1 %v1388_v26  ;;  %4143 = vmatprep.subr.mxu0 %v1436_v44  ;;  %v3795_v26 = vld [vmem:[%s5301_s3 + $0x38] sm:$0xff] }
 0x901   :  { %v1399_v43 = vsel %vm154_vm0, %v1397_v41, 0.0  ;;  %4144 = vmatpush3.msra.mxu0 %v1436_v44  ;;  %v3794_v41 = vld [vmem:[%s5301_s3 + $0x30] sm:$0xff] }
 0x902   :  { %1403 = vadd.xlane.f32.xlu0 %v1402_v42  ;;  %4145 = vmatprep.subr.mxu0 %v1435_v45  ;;  %v3793_v42 = vld [vmem:[%s5301_s3 + $0x28] sm:$0xff] }
 0x903   :  { %4146 = vmatpush3.msra.mxu0 %v1435_v45 }
 0x904   :  { %1400 = vadd.xlane.f32.xlu1 %v1399_v43  ;;  %4150 = vmatprep.subr.mxu0 %v1536_v46  ;;  %v3792_v43 = vld [vmem:[%s5301_s3 + $0x20] sm:$0xff] }
 0x987   :  { %v1393_v47 = vpop.xlane.xlu0 %1392 }
 0x988   :  { %v1396_v48 = vmul.f32 0.03125, %v1393_v47 }
 0x989   :  { %v1390_v49 = vpop.xlane.xlu1 %1389 }
 0x98a   :  { %v1395_v50 = vmul.f32 0.03125, %v1390_v49  ;;  %v1408_v52 = vmul.f32 %v1396_v48, %v1396_v48  ;;  %v1412_v61 = vsub.f32 %v1385_v37, %v1396_v48 }
 0x98b   :  { %v1404_v51 = vpop.xlane.xlu0 %1403 }
 0x98c   :  { %v1406_v53 = vmul.f32 0.03125, %v1404_v51  ;;  %v1407_v55 = vmul.f32 %v1395_v50, %v1395_v50  ;;  %v1411_v63 = vsub.f32 %v1384_v39, %v1395_v50 }
 0x98d   :  { %v1401_v54 = vpop.xlane.xlu1 %1400 }
 0x98e   :  { %v1410_v56 = vsub.f32 %v1406_v53, %v1408_v52  ;;  %v1405_v57 = vmul.f32 0.03125, %v1401_v54 }
 0x990   :  { %v1414_v58 = vadd.f32 1e-06, %v1410_v56  ;;  %v1409_v59 = vsub.f32 %v1405_v57, %v1407_v55 }
 0x992   :  { %4388 = vrsqrt.f32 %v1414_v58  ;;  %v1413_v60 = vadd.f32 1e-06, %v1409_v59  ;;  %v3790_v59 = vld [vmem:[%s5276_s11] ss:$0 sm:$0xff] }
 0x994   :  { %4390 = vrsqrt.f32 %v1413_v60 }
 0x99f   :  { %v4389_v62 = vpop.eup %4388 }
 0x9a0   :  { %v1418_v1 = vmul.f32 %v4389_v62, %v1412_v61 }
 0x9a1   :  { %v4391_v3 = vpop.eup %4390 }
 0x9a2   :  { %v1417_v4 = vmul.f32 %v4391_v3, %v1411_v63  ;;  %v1426_v6 = vmul.f32 %v3782_v0, %v1418_v1 }
 0x9a4   :  { %v1425_v9 = vmul.f32 %v3782_v0, %v1417_v4  ;;  %v1434_v11 = vadd.f32 %v3783_v8, %v1426_v6  ;;  %v3791_v0 = vld [vmem:[%s5277_s12] ss:$0 sm:$0xff] }
 0x9a6   :  { %v1433_v10 = vadd.f32 %v3783_v8, %v1425_v9 }
 0x9a8   :  { %4147 = vmatprep.mubr.msk.f32.mxu0 %vm154_vm0, %v1433_v10 }
 0x9a9   :  { %4148 = vmatmul.mubr.msk.f32.vlgmr.msra.gmra.mxu0 %vm154_vm0, %v1434_v11 }
 0x9aa   :  { %4151 = vmatpush3.msra.mxu0 %v1536_v46 }
 0x9ab   :  { %4152 = vmatprep.subr.mxu0 %v1535_v12 }
 0x9ac   :  { %4153 = vmatpush3.msra.mxu0 %v1535_v12 }
 0x9ad   :  { %4154 = vmatprep.subr.mxu0 %v1534_v13 }
 0x9ae   :  { %4155 = vmatpush3.msra.mxu0 %v1534_v13 }
 0x9af   :  { %4156 = vmatprep.subr.mxu0 %v1533_v14 }
 0x9b0   :  { %4157 = vmatpush3.msra.mxu0 %v1533_v14 }
 0x9b1   :  { %4158 = vmatprep.subr.mxu0 %v1532_v16 }
 0x9b2   :  { %4159 = vmatpush3.msra.mxu0 %v1532_v16 }
 0x9b3   :  { %4160 = vmatprep.subr.mxu0 %v1531_v17 }
 0x9b4   :  { %4161 = vmatpush3.msra.mxu0 %v1531_v17 }
 0x9b5   :  { %4162 = vmatprep.subr.mxu0 %v1530_v19 }
 0x9b6   :  { %4163 = vmatpush3.msra.mxu0 %v1530_v19 }
 0x9b7   :  { %4164 = vmatprep.subr.mxu0 %v1529_v20 }
 0x9b8   :  { %4165 = vmatpush3.msra.mxu0 %v1529_v20 }
 0x9b9   :  { %4169 = vmatprep.subr.mxu0 %v3795_v26 }
 0xa69   :  { %v4149_v22 = vpop.f32.mrf.mxu0 }
 0xa6a   :  { %v1524_v23 = vadd.f32 %v4149_v22, %v3784_v21 }
 0xa6b   :  { %v1518_v7 = vpop.f32.mrf.mxu0 }
 0xa6c   :  { %v1519_v24 = vadd.f32 %v3784_v21, %v1518_v7  ;;  %v1528_v28 = vmax.f32 %v1524_v23, 0.0 }
 0xa6e   :  { %v1527_v25 = vmax.f32 %v1519_v24, 0.0 }
 0xa70   :  { %4166 = vmatprep.mubr.msk.f32.mxu0 %vm1544_vm3, %v1527_v25 }
 0xa71   :  { %4167 = vmatmul.mubr.msk.f32.vlgmr.msra.gmra.mxu0 %vm1544_vm3, %v1528_v28 }
 0xa72   :  { %4170 = vmatpush3.msra.mxu0 %v3795_v26 }
 0xa73   :  { %4171 = vmatprep.subr.mxu0 %v3794_v41 }
 0xa74   :  { %4172 = vmatpush3.msra.mxu0 %v3794_v41 }
 0xa75   :  { %4173 = vmatprep.subr.mxu0 %v3793_v42 }
 0xa76   :  { %4174 = vmatpush3.msra.mxu0 %v3793_v42  ;;  %v3798_v42 = vld [vmem:[%s5302_s25 + $0x20] sm:$0xff] }
 0xa77   :  { %4175 = vmatprep.subr.mxu0 %v3792_v43 }
 0xa78   :  { %4176 = vmatpush3.msra.mxu0 %v3792_v43 }
 0xb31   :  { %v4168_v30 = vpop.f32.mrf.mxu0 }
 0xb32   :  { %v1623_v31 = vadd.f32 %v4168_v30, %v3787_v29 }
 0xb33   :  { %v1617_v32 = vpop.f32.mrf.mxu0 }
 0xb34   :  { %v1627_v33 = vadd.f32 %v1623_v31, %v1434_v11  ;;  %v1618_v34 = vadd.f32 %v3787_v29, %v1617_v32 }
 0xb36   :  { %v1626_v35 = vadd.f32 %v1618_v34, %v1433_v10  ;;  %v1633_v36 = vsel %vm154_vm0, %v1627_v33, 0.0  ;;  %v1639_v37 = vmul.f32 %v1627_v33, %v1627_v33 }
 0xb37   :  { %1634 = vadd.xlane.f32.xlu0 %v1633_v36 }
 0xb38   :  { %v1630_v38 = vsel %vm154_vm0, %v1626_v35, 0.0  ;;  %v1638_v39 = vmul.f32 %v1626_v35, %v1626_v35  ;;  %v1643_v27 = vsel %vm154_vm0, %v1639_v37, 0.0 }
 0xb39   :  { %1631 = vadd.xlane.f32.xlu1 %v1630_v38 }
 0xb3a   :  { %v1640_v40 = vsel %vm154_vm0, %v1638_v39, 0.0 }
 0xb3b   :  { %1644 = vadd.xlane.f32.xlu0 %v1643_v27 }
 0xb3d   :  { %1641 = vadd.xlane.f32.xlu1 %v1640_v40 }
 0xbc0   :  { %v1635_v5 = vpop.xlane.xlu0 %1634 }
 0xbc1   :  { %v1637_v2 = vmul.f32 0.03125, %v1635_v5 }
 0xbc2   :  { %v1632_v44 = vpop.xlane.xlu1 %1631 }
 0xbc3   :  { %v1636_v45 = vmul.f32 0.03125, %v1632_v44  ;;  %v1649_v47 = vmul.f32 %v1637_v2, %v1637_v2  ;;  %v1653_v56 = vsub.f32 %v1627_v33, %v1637_v2 }
 0xbc4   :  { %v1645_v46 = vpop.xlane.xlu0 %1644 }
 0xbc5   :  { %v1647_v48 = vmul.f32 0.03125, %v1645_v46  ;;  %v1648_v50 = vmul.f32 %v1636_v45, %v1636_v45  ;;  %v1652_v58 = vsub.f32 %v1626_v35, %v1636_v45 }
 0xbc6   :  { %v1642_v49 = vpop.xlane.xlu1 %1641 }
 0xbc7   :  { %v1651_v51 = vsub.f32 %v1647_v48, %v1649_v47  ;;  %v1646_v52 = vmul.f32 0.03125, %v1642_v49 }
 0xbc9   :  { %v1655_v53 = vadd.f32 1e-06, %v1651_v51  ;;  %v1650_v54 = vsub.f32 %v1646_v52, %v1648_v50 }
 0xbcb   :  { %4392 = vrsqrt.f32 %v1655_v53  ;;  %v1654_v55 = vadd.f32 1e-06, %v1650_v54 }
 0xbcd   :  { %4394 = vrsqrt.f32 %v1654_v55 }
 0xbd8   :  { %v4393_v57 = vpop.eup %4392 }
 0xbd9   :  { %v1659_v60 = vmul.f32 %v4393_v57, %v1653_v56 }
 0xbda   :  { %v4395_v61 = vpop.eup %4394 }
 0xbdb   :  { %v1658_v62 = vmul.f32 %v4395_v61, %v1652_v58  ;;  %v1667_v63 = vmul.f32 %v3790_v59, %v1659_v60 }
 0xbdd   :  { %v1666_v1 = vmul.f32 %v3790_v59, %v1658_v62  ;;  %v5008_v4 = vadd.f32 %v3791_v0, %v1667_v63  ;;  %v3799_v63 = vld [vmem:[%s5302_s25 + $0x28] sm:$0xff] }
 0xbdf   :  { %v5006_v3 = vadd.f32 %v3791_v0, %v1666_v1 }
 0xbe1   :  { %4177 = vmatprep.mubr.msk.f32.mxu0 %vm154_vm0, %v5006_v3 }
 0xbe2   :  { %4178 = vmatmul.mubr.msk.f32.vlgmr.msra.gmra.mxu0 %vm154_vm0, %v5008_v4 }
 0xca2   :  { %v5014_v6 = vpop.f32.mrf.mxu0 }
 0xca3   :  { %1771 = vrot.lane.b32.xlu1 %v5014_v6, %s4623_s1 }
 0xca4   :  { %v5018_v8 = vpop.f32.mrf.mxu0 }
 0xca5   :  { %1769 = vrot.lane.b32.xlu0 %v5018_v8, %s4623_s1  ;;  %4184 = vmatprep.mubr.msk.f32.mxu0 %vm246_vm1, %v5018_v8 }
 0xd15   :  { %v1772_v9 = vpop.permute.xlu1 %1771 }
 0xd16   :  { %4180 = vmatprep.subr.msk.mxu0 %vm246_vm1, %v1772_v9 }
 0xd17   :  { %4181 = vmatpush3.xpose.msk.msra.mxu0 %vm246_vm1, %v1772_v9  ;;  %v1770_v10 = vpop.permute.xlu0 %1769 }
 0xd18   :  { %4182 = vmatprep.subr.msk.mxu0 %vm246_vm1, %v1770_v10 }
 0xd1b   :  { %4183 = vmatpush3.xpose.msk.msra.mxu0 %vm246_vm1, %v1770_v10 }
 0xd1e   :  { %4185 = vmatmul.mubr.msk.f32.vlgmr.msra.gmra.mxu0 %vm246_vm1, %v5014_v6 }
 0xdde   :  { %v4186_v11 = vpop.f32.mrf.mxu0 }
 0xddf   :  { %v1857_v12 = vmul.f32 0.35355338, %v4186_v11 }
 0xde0   :  { %v1847_v13 = vpop.f32.mrf.mxu0 }
 0xde1   :  { %v1856_v14 = vmul.f32 0.35355338, %v1847_v13  ;;  %v1859_v16 = vadd.f32 %v1857_v12, %v4820_v15 }
 0xde3   :  { %v1863_v17 = vsel %vm334_vm2, %v1859_v16, -inf  ;;  %v1858_v19 = vadd.f32 %v1856_v14, %v4822_v18 }
 0xde4   :  { %1864 = vmax.xlane.f32.xlu0 %v1863_v17 }
 0xde5   :  { %v1860_v20 = vsel %vm334_vm2, %v1858_v19, -inf }
 0xde6   :  { %1861 = vmax.xlane.f32.xlu1 %v1860_v20 }
 0xdf7   :  { %1884 = vrot.lane.b32.xlu1 %v5014_v6, %s4625_s23 }
 0xdfb   :  { %1975 = vrot.lane.b32.xlu1 %v5014_v6, %s4622_s21 }
 0xdff   :  { %1973 = vrot.lane.b32.xlu1 %v5018_v8, %s4622_s21 }
 0xe6d   :  { %v1865_v21 = vpop.xlane.xlu0 %1864 }
 0xe6e   :  { %v1867_v22 = vsub.f32 %v1859_v16, %v1865_v21 }
 0xe6f   :  { %v1862_v23 = vpop.xlane.xlu1 %1861 }
 0xe70   :  { %v1870_v7 = vmul.f32 1.442695, %v1867_v22  ;;  %v1866_v24 = vsub.f32 %v1858_v19, %v1862_v23 }
 0xe72   :  { %4396 = vpow2.f32 %v1870_v7  ;;  %v1868_v25 = vmul.f32 1.442695, %v1866_v24 }
 0xe73   :  { %v1885_v28 = vpop.permute.xlu1 %1884 }
 0xe74   :  { %4398 = vpow2.f32 %v1868_v25  ;;  %4187 = vmatprep.subr.mxu1 %v1885_v28 }
 0xe75   :  { %4188 = vmatpush3.msra.mxu1 %v1885_v28 }
 0xe77   :  { %v1976_v33 = vpop.permute.xlu1 %1975 }
 0xe7b   :  { %v1974_v34 = vpop.permute.xlu1 %1973 }
 0xe7f   :  { %v4397_v29 = vpop.eup %4396 }
 0xe80   :  { %v1875_v30 = vsel %vm334_vm2, %v4397_v29, 0.0 }
 0xe81   :  { %v4399_v31 = vpop.eup %4398  ;;  %1876 = vadd.xlane.f32.xlu0 %v1875_v30  ;;  %v4436_v30 = vld [vmem:[#allocation5 + $0x8] sm:$0xff] }
 0xe82   :  { %v1872_v32 = vsel %vm334_vm2, %v4399_v31, 0.0 }
 0xe83   :  { %1873 = vadd.xlane.f32.xlu1 %v1872_v32 }
 0xe94   :  { %1971 = vrot.lane.b32.xlu1 %v5014_v6, %s4624_s2 }
 0xe97   :  { %1882 = vrot.lane.b32.xlu0 %v5018_v8, %s4625_s23  ;;  %s4635_s23 = smov [#allocation14]  }
 0xe9b   :  { %1969 = vrot.lane.b32.xlu0 %v5018_v8, %s4624_s2 }
 0xf0a   :  { %v1877_v35 = vpop.xlane.xlu0 %1876 }
 0xf0b   :  { %4400 = vrcp.f32 %v1877_v35 }
 0xf0c   :  { %v1874_v36 = vpop.xlane.xlu1 %1873 }
 0xf0d   :  { %4402 = vrcp.f32 %v1874_v36 }
 0xf0e   :  { %v1883_v37 = vpop.permute.xlu0 %1882 }
 0xf0f   :  { %4189 = vmatprep.subr.mxu1 %v1883_v37 }
 0xf10   :  { %4190 = vmatpush3.msra.mxu1 %v1883_v37  ;;  %v1972_v41 = vpop.permute.xlu1 %1971 }
 0xf11   :  { %4194 = vmatprep.subr.msk.mxu1 %vm246_vm1, %v1976_v33 }
 0xf12   :  { %v1970_v26 = vpop.permute.xlu0 %1969 }
 0xf18   :  { %v4401_v38 = vpop.eup %4400 }
 0xf19   :  { %v1881_v40 = vmul.f32 %v4401_v38, %v4397_v29 }
 0xf1a   :  { %v4403_v39 = vpop.eup %4402 }
 0xf1b   :  { %v1880_v27 = vmul.f32 %v4403_v39, %v4399_v31 }
 0xf1d   :  { %4191 = vmatprep.mubr.msk.f32.mxu1 %vm334_vm2, %v1880_v27 }
 0xf1e   :  { %4192 = vmatmul.mubr.msk.f32.vlgmr.msra.gmra.mxu1 %vm334_vm2, %v1881_v40 }
 0xf1f   :  { %4195 = vmatpush3.xpose.msk.msra.mxu1 %vm246_vm1, %v1976_v33  ;;  %4198 = vmatprep.mubr.msk.f32.mxu1 %vm246_vm1, %v1970_v26  ;;  %v4437_v33 = vld [vmem:[#allocation5] sm:$0xff] }
 0xf20   :  { %4196 = vmatprep.subr.msk.mxu1 %vm246_vm1, %v1974_v34 }
 0xf23   :  { %4197 = vmatpush3.xpose.msk.msra.mxu1 %vm246_vm1, %v1974_v34 }
 0xf24   :  { %4213 = vmatprep.subr.mxu1 %v3798_v42 }
 0xf26   :  { %4199 = vmatmul.mubr.msk.f32.vlgmr.msra.gmra.mxu1 %vm246_vm1, %v1972_v41 }
 0xf27   :  { %4214 = vmatpush3.msra.mxu1 %v3798_v42 }
 0xfde   :  { %v4193_v43 = vpop.f32.mrf.mxu1 }
 0xfe0   :  { %v1960_v5 = vpop.f32.mrf.mxu1 }
 0xfe1   :  { %4215 = vmatprep.mubr.msk.f32.mxu1 %vm246_vm1, %v1960_v5 }
 0xfe2   :  { %4216 = vmatmul.mubr.msk.f32.vlgmr.msra.gmra.mxu1 %vm246_vm1, %v4193_v43 }
 0xfe6   :  { %v4200_v2 = vpop.f32.mrf.mxu1 }
 0xfe7   :  { %v2061_v44 = vmul.f32 0.35355338, %v4200_v2 }
 0xfe8   :  { %v2051_v45 = vpop.f32.mrf.mxu1 }
 0xfe9   :  { %v2060_v46 = vmul.f32 0.35355338, %v2051_v45  ;;  %v2063_v47 = vadd.f32 %v2061_v44, %v4820_v15 }
 0xfeb   :  { %v2067_v48 = vsel %vm334_vm2, %v2063_v47, -inf  ;;  %v2062_v49 = vadd.f32 %v2060_v46, %v4822_v18 }
 0xfec   :  { %2068 = vmax.xlane.f32.xlu1 %v2067_v48 }
 0xfed   :  { %v2064_v50 = vsel %vm334_vm2, %v2062_v49, -inf }
 0xfee   :  { %2065 = vmax.xlane.f32.xlu0 %v2064_v50 }
 0xffd   :  { %2088 = vrot.lane.b32.xlu1 %v5014_v6, %s4626_s22 }
0x1001   :  { %2341 = vrot.lane.b32.xlu1 %v5014_v6, %s4627_s19 }
0x1005   :  { %2339 = vrot.lane.b32.xlu1 %v5018_v8, %s4627_s19  ;;  %s5304_s19 = smov 40  }
0x1009   :  { %2337 = vrot.lane.b32.xlu1 %v5014_v6, %s4628_s26 }
0x100d   :  { %2626 = vrot.lane.b32.xlu1 %v5018_v8, %s4629_s27 }
0x1011   :  { %2624 = vrot.lane.b32.xlu1 %v5014_v6, %s4630_s28 }
0x1075   :  { %v2069_v15 = vpop.xlane.xlu1 %2068 }
0x1076   :  { %v2071_v18 = vsub.f32 %v2063_v47, %v2069_v15 }
0x1077   :  { %v2066_v51 = vpop.xlane.xlu0 %2065 }
0x1078   :  { %v2074_v52 = vmul.f32 1.442695, %v2071_v18  ;;  %v2070_v53 = vsub.f32 %v2062_v49, %v2066_v51 }
0x1079   :  { %v2089_v54 = vpop.permute.xlu1 %2088 }
0x107a   :  { %4404 = vpow2.f32 %v2074_v52  ;;  %v2072_v55 = vmul.f32 1.442695, %v2070_v53  ;;  %4201 = vmatprep.subr.mxu0 %v2089_v54 }
0x107b   :  { %4202 = vmatpush3.msra.mxu0 %v2089_v54 }
0x107c   :  { %4406 = vpow2.f32 %v2072_v55 }
0x107d   :  { %v2342_v11 = vpop.permute.xlu1 %2341 }
0x1081   :  { %v2340_v14 = vpop.permute.xlu1 %2339 }
0x1085   :  { %v2338_v19 = vpop.permute.xlu1 %2337 }
0x1087   :  { %v4405_v56 = vpop.eup %4404 }
0x1088   :  { %v2079_v57 = vsel %vm334_vm2, %v4405_v56, 0.0 }
0x1089   :  { %v4407_v58 = vpop.eup %4406  ;;  %2080 = vadd.xlane.f32.xlu0 %v2079_v57  ;;  %v2627_v21 = vpop.permute.xlu1 %2626  ;;  %v3800_v57 = vld [vmem:[%s5302_s25 + $0x30] sm:$0xff] }
0x108a   :  { %v2076_v59 = vsel %vm334_vm2, %v4407_v58, 0.0 }
0x108d   :  { %2077 = vadd.xlane.f32.xlu0 %v2076_v59  ;;  %v2625_v22 = vpop.permute.xlu1 %2624 }
0x10a3   :  { %2086 = vrot.lane.b32.xlu0 %v5018_v8, %s4626_s22  ;;  %s5303_s22 = smov 48  }
0x10a7   :  { %2335 = vrot.lane.b32.xlu0 %v5018_v8, %s4628_s26 }
0x10ab   :  { %2628 = vrot.lane.b32.xlu0 %v5014_v6, %s4629_s27 }
0x10af   :  { %2622 = vrot.lane.b32.xlu0 %v5018_v8, %s4630_s28 }
0x1112   :  { %v2081_v60 = vpop.xlane.xlu0 %2080 }
0x1113   :  { %4408 = vrcp.f32 %v2081_v60 }
0x1116   :  { %v2078_v61 = vpop.xlane.xlu0 %2077 }
0x1117   :  { %4410 = vrcp.f32 %v2078_v61 }
0x111a   :  { %v2087_v62 = vpop.permute.xlu0 %2086 }
0x111b   :  { %4203 = vmatprep.subr.mxu0 %v2087_v62 }
0x111c   :  { %4204 = vmatpush3.msra.mxu0 %v2087_v62 }
0x111d   :  { %4208 = vmatprep.subr.mxu0 %v3799_v63 }
0x111e   :  { %v2336_v12 = vpop.permute.xlu0 %2335 }
0x1120   :  { %v4409_v0 = vpop.eup %4408 }
0x1121   :  { %v2085_v10 = vmul.f32 %v4409_v0, %v4405_v56 }
0x1122   :  { %v2629_v17 = vpop.permute.xlu0 %2628 }
0x1124   :  { %v4411_v1 = vpop.eup %4410 }
0x1125   :  { %v2084_v9 = vmul.f32 %v4411_v1, %v4407_v58 }
0x1126   :  { %v2623_v20 = vpop.permute.xlu0 %2622 }
0x1127   :  { %4205 = vmatprep.mubr.msk.f32.mxu0 %vm334_vm2, %v2084_v9 }
0x1128   :  { %4206 = vmatmul.mubr.msk.f32.vlgmr.msra.gmra.mxu0 %vm334_vm2, %v2085_v10 }
0x1129   :  { %4209 = vmatpush3.msra.mxu0 %v3799_v63 }
0x112a   :  { %4218 = vmatprep.subr.msk.mxu0 %vm246_vm1, %v2342_v11 }
0x11e8   :  { %v4207_v13 = vpop.f32.mrf.mxu0 }
0x11ea   :  { %v2164_v16 = vpop.f32.mrf.mxu0 }
0x11eb   :  { %4210 = vmatprep.mubr.msk.f32.mxu0 %vm246_vm1, %v2164_v16 }
0x11ec   :  { %4211 = vmatmul.mubr.msk.f32.vlgmr.msra.gmra.mxu0 %vm246_vm1, %v4207_v13 }
0x11ed   :  { %4219 = vmatpush3.xpose.msk.msra.mxu0 %vm246_vm1, %v2342_v11  ;;  %4222 = vmatprep.mubr.msk.f32.mxu0 %vm246_vm1, %v2336_v12  ;;  %v4217_v11 = vpop.f32.mrf.mxu1 }
0x11ee   :  { %4220 = vmatprep.subr.msk.mxu0 %vm246_vm1, %v2340_v14 }
0x11ef   :  { %v2326_v12 = vpop.f32.mrf.mxu1 }
0x11f1   :  { %4221 = vmatpush3.xpose.msk.msra.mxu0 %vm246_vm1, %v2340_v14 }
0x11f2   :  { %4237 = vmatprep.subr.msk.mxu0 %vm246_vm1, %v2629_v17 }
0x11f4   :  { %4223 = vmatmul.mubr.msk.f32.vlgmr.msra.gmra.mxu0 %vm246_vm1, %v2338_v19 }
0x11f5   :  { %4238 = vmatpush3.xpose.msk.msra.mxu0 %vm246_vm1, %v2629_v17  ;;  %4241 = vmatprep.mubr.msk.f32.mxu0 %vm246_vm1, %v2623_v20 }
0x11f6   :  { %4239 = vmatprep.subr.msk.mxu0 %vm246_vm1, %v2627_v21 }
0x11f9   :  { %4240 = vmatpush3.xpose.msk.msra.mxu0 %vm246_vm1, %v2627_v21 }
0x11fc   :  { %4242 = vmatmul.mubr.msk.f32.vlgmr.msra.gmra.mxu0 %vm246_vm1, %v2625_v22  ;;  %v3801_v22 = vld [vmem:[%s5302_s25 + $0x38] sm:$0xff] }
0x12ac   :  { %v5106_v23 = vpop.f32.mrf.mxu0 }
0x12ae   :  { %v5108_v7 = vpop.f32.mrf.mxu0 }
0x12b4   :  { %v4224_v24 = vpop.f32.mrf.mxu0 }
0x12b5   :  { %v2427_v25 = vmul.f32 0.35355338, %v4224_v24  ;;  %v2332_v24 = vadd.f32 %v4217_v11, %v5106_v23 }
0x12b6   :  { %v2417_v28 = vpop.f32.mrf.mxu0 }
0x12b7   :  { %v2426_v29 = vmul.f32 0.35355338, %v2417_v28  ;;  %v2429_v31 = vadd.f32 %v4436_v30, %v2427_v25  ;;  %v2327_v28 = vadd.f32 %v2326_v12, %v5108_v7  ;;  %v3849_v12 = vld [vmem:[%s5274_s9 + $0x58] sm:$0xff] }
0x12b9   :  { %v2433_v32 = vsel %vm334_vm2, %v2429_v31, -inf  ;;  %v2428_v34 = vadd.f32 %v4437_v33, %v2426_v29 }
0x12ba   :  { %2434 = vmax.xlane.f32.xlu1 %v2433_v32 }
0x12bb   :  { %v2430_v35 = vsel %vm334_vm2, %v2428_v34, -inf }
0x12bc   :  { %2431 = vmax.xlane.f32.xlu0 %v2430_v35  ;;  %v4243_v36 = vpop.f32.mrf.mxu0 }
0x12bd   :  { %v2714_v15 = vmul.f32 0.35355338, %v4243_v36 }
0x12be   :  { %v2704_v37 = vpop.f32.mrf.mxu0 }
0x12bf   :  { %v2713_v38 = vmul.f32 0.35355338, %v2704_v37  ;;  %v2716_v52 = vadd.f32 %v4436_v30, %v2714_v15 }
0x12c1   :  { %v2715_v39 = vadd.f32 %v4437_v33, %v2713_v38  ;;  %v2720_v53 = vsel %vm334_vm2, %v2716_v52, -inf }
0x12c3   :  { %v2717_v27 = vsel %vm334_vm2, %v2715_v39, -inf }
0x12cb   :  { %2454 = vrot.lane.b32.xlu1 %v5014_v6, %s5303_s22 }
0x12ef   :  { %2718 = vmax.xlane.f32.xlu1 %v2717_v27 }
0x1343   :  { %v2435_v40 = vpop.xlane.xlu1 %2434 }
0x1344   :  { %v2437_v26 = vsub.f32 %v2429_v31, %v2435_v40 }
0x1345   :  { %v2432_v41 = vpop.xlane.xlu0 %2431 }
0x1346   :  { %v2440_v42 = vmul.f32 1.442695, %v2437_v26  ;;  %v2436_v43 = vsub.f32 %v2428_v34, %v2432_v41 }
0x1347   :  { %v2455_v5 = vpop.permute.xlu1 %2454 }
0x1348   :  { %4412 = vpow2.f32 %v2440_v42  ;;  %v2438_v2 = vmul.f32 1.442695, %v2436_v43  ;;  %4225 = vmatprep.subr.mxu1 %v2455_v5  ;;  %v3839_v42 = vld [vmem:[%s5272_s7 + $0x28] sm:$0xff]  ;;  %v3838_v43 = vld [vmem:[%s5272_s7 + $0x20] sm:$0xff] }
0x1349   :  { %4226 = vmatpush3.msra.mxu1 %v2455_v5  ;;  %v3853_v5 = vld [vmem:[%s5274_s9 + $0x78] sm:$0xff] }
0x134a   :  { %4414 = vpow2.f32 %v2438_v2  ;;  %v3852_v2 = vld [vmem:[%s5274_s9 + $0x70] sm:$0xff] }
0x1355   :  { %v4413_v44 = vpop.eup %4412 }
0x1356   :  { %v2445_v45 = vsel %vm334_vm2, %v4413_v44, 0.0 }
0x1357   :  { %v4415_v46 = vpop.eup %4414  ;;  %2446 = vadd.xlane.f32.xlu0 %v2445_v45  ;;  %v3850_v45 = vld [vmem:[%s5274_s9 + $0x60] sm:$0xff] }
0x1358   :  { %v2442_v47 = vsel %vm334_vm2, %v4415_v46, 0.0 }
0x135b   :  { %2443 = vadd.xlane.f32.xlu0 %v2442_v47 }
0x1371   :  { %2452 = vrot.lane.b32.xlu0 %v5018_v8, %s5303_s22  ;;  %s3732_s22 = sshll.u32 %s4635_s23, 4  ;;  %s3733_s22 = int_to_ptr.vmem [resolvable:$true] %s3732_s22 }
0x1372   :  { %p4563_p3 = scmp.lt.s32.totalorder %s3733_s22, %s3733_s22 }
0x1378   :  { %v2719_v48 = vpop.xlane.xlu1 %2718 }
0x1379   :  { %v2723_v49 = vsub.f32 %v2715_v39, %v2719_v48 }
0x137b   :  { %v2725_v50 = vmul.f32 1.442695, %v2723_v49 }
0x137d   :  { %4416 = vpow2.f32 %v2725_v50 }
0x138a   :  { %v4417_v18 = vpop.eup %4416 }
0x138b   :  { %v2729_v51 = vsel %vm334_vm2, %v4417_v18, 0.0 }
0x138c   :  { %2730 = vadd.xlane.f32.xlu1 %v2729_v51 }
0x1390   :  { %2721 = vmax.xlane.f32.xlu0 %v2720_v53 }
0x139d   :  { %2741 = vrot.lane.b32.xlu1 %v5014_v6, %s5304_s19 }
0x13e0   :  { %v2447_v54 = vpop.xlane.xlu0 %2446 }
0x13e1   :  { %4418 = vrcp.f32 %v2447_v54 }
0x13e4   :  { %v2444_v55 = vpop.xlane.xlu0 %2443 }
0x13e5   :  { %4420 = vrcp.f32 %v2444_v55 }
0x13e8   :  { %v2453_v56 = vpop.permute.xlu0 %2452 }
0x13e9   :  { %4227 = vmatprep.subr.mxu1 %v2453_v56 }
0x13ea   :  { %4228 = vmatpush3.msra.mxu1 %v2453_v56 }
0x13eb   :  { %4232 = vmatprep.subr.mxu1 %v3800_v57 }
0x13ee   :  { %v4419_v58 = vpop.eup %4418 }
0x13ef   :  { %v2451_v61 = vmul.f32 %v4419_v58, %v4413_v44  ;;  %v3851_v44 = vld [vmem:[%s5274_s9 + $0x68] sm:$0xff] }
0x13f2   :  { %v4421_v59 = vpop.eup %4420 }
0x13f3   :  { %v2450_v60 = vmul.f32 %v4421_v59, %v4415_v46 }
0x13f5   :  { %4229 = vmatprep.mubr.msk.f32.mxu1 %vm334_vm2, %v2450_v60 }
0x13f6   :  { %4230 = vmatmul.mubr.msk.f32.vlgmr.msra.gmra.mxu1 %vm334_vm2, %v2451_v61  ;;  %v3836_v61 = vld [vmem:[%s5270_s5 + $0x1] ss:$0 sm:$0xff] }
0x13f7   :  { %4233 = vmatpush3.msra.mxu1 %v3800_v57 }
0x1415   :  { %v2731_v6 = vpop.xlane.xlu1 %2730 }
0x1419   :  { %v2742_v62 = vpop.permute.xlu1 %2741  ;;  %v2722_v63 = vpop.xlane.xlu0 %2721 }
0x141a   :  { %v2724_v0 = vsub.f32 %v2716_v52, %v2722_v63  ;;  %4244 = vmatprep.subr.mxu1 %v2742_v62 }
0x141c   :  { %v2727_v1 = vmul.f32 1.442695, %v2724_v0 }
0x141e   :  { %4422 = vpow2.f32 %v2727_v1  ;;  %v3837_v1 = vld [vmem:[%s5271_s6 + $0x1] ss:$0 sm:$0xff] }
0x141f   :  { %4424 = vrcp.f32 %v2731_v6 }
0x142b   :  { %v4423_v9 = vpop.eup %4422 }
0x142c   :  { %v2732_v10 = vsel %vm334_vm2, %v4423_v9, 0.0  ;;  %v4425_v13 = vpop.eup %4424 }
0x142d   :  { %2733 = vadd.xlane.f32.xlu0 %v2732_v10  ;;  %v2737_v19 = vmul.f32 %v4425_v13, %v4417_v18  ;;  %v3848_v13 = vld [vmem:[%s5274_s9 + $0x50] sm:$0xff] }
0x1443   :  { %2739 = vrot.lane.b32.xlu0 %v5018_v8, %s5304_s19 }
0x14b6   :  { %v4231_v14 = vpop.f32.mrf.mxu1  ;;  %v2734_v16 = vpop.xlane.xlu0 %2733 }
0x14b7   :  { %4426 = vrcp.f32 %v2734_v16  ;;  %v3846_v16 = vld [vmem:[%s5274_s9 + $0x40] sm:$0xff] }
0x14b8   :  { %v2530_v17 = vpop.f32.mrf.mxu1 }
0x14b9   :  { %4234 = vmatprep.mubr.msk.f32.mxu1 %vm246_vm1, %v2530_v17  ;;  %v3843_v17 = vld [vmem:[%s5273_s8 + $0x1] ss:$0 sm:$0xff] }
0x14ba   :  { %4235 = vmatmul.mubr.msk.f32.vlgmr.msra.gmra.mxu1 %vm246_vm1, %v4231_v14  ;;  %v2740_v20 = vpop.permute.xlu0 %2739  ;;  %v3847_v14 = vld [vmem:[%s5274_s9 + $0x48] sm:$0xff] }
0x14bb   :  { %4245 = vmatpush3.msra.mxu1 %v2742_v62  ;;  %4248 = vmatprep.mubr.msk.f32.mxu1 %vm334_vm2, %v2737_v19 }
0x14bc   :  { %4246 = vmatprep.subr.mxu1 %v2740_v20 }
0x14bd   :  { %4247 = vmatpush3.msra.mxu1 %v2740_v20 }
0x14be   :  { %4251 = vmatprep.subr.mxu1 %v3801_v22 }
0x14c4   :  { %v4427_v8 = vpop.eup %4426 }
0x14c5   :  { %v2738_v21 = vmul.f32 %v4427_v8, %v4423_v9 }
0x14c7   :  { %4249 = vmatmul.mubr.msk.f32.vlgmr.msra.gmra.mxu1 %vm334_vm2, %v2738_v21 }
0x14c8   :  { %4252 = vmatpush3.msra.mxu1 %v3801_v22 }
0x14c9   :  { %4267 = vmatprep.subr.mxu1 %v3853_v5 }
0x157a   :  { %v4236_v25 = vpop.f32.mrf.mxu1 }
0x157b   :  { %v2621_v29 = vadd.f32 %v4236_v25, %v2332_v24  ;;  %v3855_v25 = vld [vmem:[%s5275_s10 + $0x1] ss:$0 sm:$0xff] }
0x157c   :  { %v2611_v30 = vpop.f32.mrf.mxu1 }
0x157d   :  { %v2620_v31 = vadd.f32 %v2611_v30, %v2327_v28 }
0x1587   :  { %v4250_v32 = vpop.f32.mrf.mxu1 }
0x1589   :  { %v2817_v33 = vpop.f32.mrf.mxu1 }
0x158a   :  { %4253 = vmatprep.mubr.msk.f32.mxu1 %vm246_vm1, %v2817_v33 }
0x158b   :  { %4254 = vmatmul.mubr.msk.f32.vlgmr.msra.gmra.mxu1 %vm246_vm1, %v4250_v32 }
0x158c   :  { %4268 = vmatpush3.msra.mxu1 %v3853_v5 }
0x158d   :  { %4269 = vmatprep.subr.mxu1 %v3852_v2 }
0x158e   :  { %4270 = vmatpush3.msra.mxu1 %v3852_v2 }
0x158f   :  { %4271 = vmatprep.subr.mxu1 %v3851_v44 }
0x1590   :  { %4272 = vmatpush3.msra.mxu1 %v3851_v44 }
0x1591   :  { %4273 = vmatprep.subr.mxu1 %v3850_v45 }
0x1592   :  { %4274 = vmatpush3.msra.mxu1 %v3850_v45 }
0x1593   :  { %4275 = vmatprep.subr.mxu1 %v3849_v12 }
0x1594   :  { %4276 = vmatpush3.msra.mxu1 %v3849_v12  ;;  %v3406_v12 = vld [vmem:[#allocation10 + $0xe8] sm:$0xff] }
0x1595   :  { %4277 = vmatprep.subr.mxu1 %v3848_v13 }
0x1596   :  { %4278 = vmatpush3.msra.mxu1 %v3848_v13  ;;  %v3390_v13 = vld [vmem:[#allocation10 + $0x68] sm:$0xff] }
0x1597   :  { %4279 = vmatprep.subr.mxu1 %v3847_v14 }
0x1598   :  { %4280 = vmatpush3.msra.mxu1 %v3847_v14  ;;  %v3405_v14 = vld [vmem:[#allocation10 + $0xe0] sm:$0xff] }
0x1599   :  { %4281 = vmatprep.subr.mxu1 %v3846_v16 }
0x159a   :  { %4282 = vmatpush3.msra.mxu1 %v3846_v16  ;;  %v3389_v16 = vld [vmem:[#allocation10 + $0x60] sm:$0xff] }
0x164b   :  { %v4255_v34 = vpop.f32.mrf.mxu1 }
0x164c   :  { %v2908_v35 = vadd.f32 %v4255_v34, %v2621_v29 }
0x164d   :  { %v2898_v36 = vpop.f32.mrf.mxu1 }
0x164e   :  { %v2910_v37 = vadd.f32 %v2908_v35, %v5008_v4  ;;  %v2907_v38 = vadd.f32 %v2898_v36, %v2620_v31  ;;  %v3841_v4 = vld [vmem:[%s5272_s7 + $0x38] sm:$0xff] }
0x164f   :  { %4256 = vmatprep.subr.mxu0 %v3841_v4 }
0x1650   :  { %v2909_v23 = vadd.f32 %v2907_v38, %v5006_v3  ;;  %v2918_v39 = vsel %vm154_vm0, %v2910_v37, 0.0  ;;  %v2924_v7 = vmul.f32 %v2910_v37, %v2910_v37  ;;  %v3840_v3 = vld [vmem:[%s5272_s7 + $0x30] sm:$0xff]  ;;  %4257 = vmatpush3.msra.mxu0 %v3841_v4  ;;  %s4558_s7 = scalar_lea.vmem %s3733_s22, 32 }
0x1651   :  { %2919 = vadd.xlane.f32.xlu0 %v2918_v39  ;;  %4258 = vmatprep.subr.mxu0 %v3840_v3  ;;  %v4633_v39 = vmov 0.0   ;;  %p4559_p2 = scmp.ne.s32.totalorder %s3733_s22, %s4558_s7  ;;  %p4564_p4 = scmp.lt.s32.totalorder %s4558_s7, %s4558_s7 }
0x1652   :  { %v2915_v27 = vsel %vm154_vm0, %v2909_v23, 0.0  ;;  %v2923_v40 = vmul.f32 %v2909_v23, %v2909_v23  ;;  %v2928_v26 = vsel %vm154_vm0, %v2924_v7, 0.0  ;;  %4259 = vmatpush3.msra.mxu0 %v3840_v3 }
0x1653   :  { %2916 = vadd.xlane.f32.xlu1 %v2915_v27  ;;  %4260 = vmatprep.subr.mxu0 %v3839_v42  ;;  %p4565_p5 = por %p4564_p4, %p4563_p3 }
0x1654   :  { %v2925_v41 = vsel %vm154_vm0, %v2923_v40, 0.0  ;;  %4261 = vmatpush3.msra.mxu0 %v3839_v42 }
0x1655   :  { %2929 = vadd.xlane.f32.xlu0 %v2928_v26  ;;  %4262 = vmatprep.subr.mxu0 %v3838_v43  ;;  %p4566_p6 = pnand %p4565_p5, %p4559_p2 }
0x1656   :  { %4263 = vmatpush3.msra.mxu0 %v3838_v43 }
0x1657   :  { %2926 = vadd.xlane.f32.xlu1 %v2925_v41  ;;  %4286 = vmatprep.subr.mxu0 %v4633_v39 }
0x16da   :  { %v2920_v46 = vpop.xlane.xlu0 %2919 }
0x16db   :  { %v2922_v47 = vmul.f32 0.03125, %v2920_v46 }
0x16dc   :  { %v2917_v48 = vpop.xlane.xlu1 %2916 }
0x16dd   :  { %v2921_v49 = vmul.f32 0.03125, %v2917_v48  ;;  %v2934_v15 = vmul.f32 %v2922_v47, %v2922_v47  ;;  %v2938_v58 = vsub.f32 %v2910_v37, %v2922_v47 }
0x16de   :  { %v2930_v50 = vpop.xlane.xlu0 %2929 }
0x16df   :  { %v2932_v18 = vmul.f32 0.03125, %v2930_v50  ;;  %v2933_v52 = vmul.f32 %v2921_v49, %v2921_v49  ;;  %v2937_v60 = vsub.f32 %v2909_v23, %v2921_v49  ;;  %v3860_v49 = vld [vmem:[%s5276_s11 + $0x1] ss:$0 sm:$0xff] }
0x16e0   :  { %v2927_v51 = vpop.xlane.xlu1 %2926 }
0x16e1   :  { %v2936_v53 = vsub.f32 %v2932_v18, %v2934_v15  ;;  %v2931_v54 = vmul.f32 0.03125, %v2927_v51  ;;  %v3861_v51 = vld [vmem:[%s5277_s12 + $0x1] ss:$0 sm:$0xff] }
0x16e3   :  { %v2940_v55 = vadd.f32 1e-06, %v2936_v53  ;;  %v2935_v56 = vsub.f32 %v2931_v54, %v2933_v52 }
0x16e5   :  { %4428 = vrsqrt.f32 %v2940_v55  ;;  %v2939_v57 = vadd.f32 1e-06, %v2935_v56 }
0x16e7   :  { %4430 = vrsqrt.f32 %v2939_v57  ;;  %v3207_v57 = vld [vmem:[#allocation7] sm:$0x3] }
0x16f2   :  { %v4429_v59 = vpop.eup %4428 }
0x16f3   :  { %v2944_v6 = vmul.f32 %v4429_v59, %v2938_v58  ;;  %v3288_v58 = vld [vmem:[#allocation8 + $0x38] sm:$0xff]  ;;  %v3287_v59 = vld [vmem:[#allocation8 + $0x30] sm:$0xff] }
0x16f4   :  { %v4431_v62 = vpop.eup %4430 }
0x16f5   :  { %v2943_v63 = vmul.f32 %v4431_v62, %v2937_v60  ;;  %v2952_v0 = vmul.f32 %v3836_v61, %v2944_v6  ;;  %v3286_v60 = vld [vmem:[#allocation8 + $0x28] sm:$0xff]  ;;  %v3284_v6 = vld [vmem:[#allocation8 + $0x18] sm:$0xff]  ;;  %v3283_v62 = vld [vmem:[#allocation8 + $0x10] sm:$0xff] }
0x16f7   :  { %v2951_v9 = vmul.f32 %v3836_v61, %v2943_v63  ;;  %v2960_v11 = vadd.f32 %v3837_v1, %v2952_v0  ;;  %v3285_v61 = vld [vmem:[#allocation8 + $0x20] sm:$0xff]  ;;  %v3282_v63 = vld [vmem:[#allocation8 + $0x8] sm:$0xff] }
0x16f8   :  { %v3281_v0 = vld [vmem:[#allocation8] sm:$0xff] }
0x16f9   :  { %v2959_v10 = vadd.f32 %v3837_v1, %v2951_v9  ;;  %v3408_v1 = vld [vmem:[#allocation10 + $0xf8] sm:$0xff] }
0x16fa   :  { %v3392_v9 = vld [vmem:[#allocation10 + $0x78] sm:$0xff]  ;;  %4000 = vmatprep.subr.mxu1 %v3408_v1 }
0x16fb   :  { %4264 = vmatprep.mubr.msk.f32.mxu0 %vm154_vm0, %v2959_v10 }
0x16fc   :  { %4265 = vmatmul.mubr.msk.f32.vlgmr.msra.gmra.mxu0 %vm154_vm0, %v2960_v11 }
0x16fd   :  { %4290 = vmatprep.mubr.msk.f32.mxu0 %vm4634_vm4, %v4633_v39 }
0x17bc   :  { %v4266_v19 = vpop.f32.mrf.mxu0 }
0x17bd   :  { %v3052_v20 = vadd.f32 %v4266_v19, %v3843_v17  ;;  %v3388_v19 = vld [vmem:[#allocation10 + $0x58] sm:$0xff] }
0x17be   :  { %v3046_v8 = vpop.f32.mrf.mxu0 }
0x17bf   :  { %v3047_v21 = vadd.f32 %v3843_v17, %v3046_v8  ;;  %v3056_v24 = vmax.f32 %v3052_v20, 0.0  ;;  %v3404_v17 = vld [vmem:[#allocation10 + $0xd8] sm:$0xff]  ;;  %v3403_v20 = vld [vmem:[#allocation10 + $0xd0] sm:$0xff] }
0x17c0   :  { %v3387_v8 = vld [vmem:[#allocation10 + $0x50] sm:$0xff] }
0x17c1   :  { %v3055_v22 = vmax.f32 %v3047_v21, 0.0  ;;  %v3402_v21 = vld [vmem:[#allocation10 + $0xc8] sm:$0xff] }
0x17c3   :  { %4283 = vmatprep.mubr.msk.f32.mxu1 %vm1544_vm3, %v3055_v22  ;;  %v3386_v22 = vld [vmem:[#allocation10 + $0x48] sm:$0xff] }
0x17c4   :  { %4284 = vmatmul.mubr.msk.f32.vlgmr.msra.gmra.mxu1 %vm1544_vm3, %v3056_v24  ;;  %v3401_v24 = vld [vmem:[#allocation10 + $0xc0] sm:$0xff] }
0x17c5   :  { %4001 = vmatpush3.msra.mxu1 %v3392_v9 }
0x1884   :  { %v4285_v28 = vpop.f32.mrf.mxu1 }
0x1885   :  { %v3152_v29 = vadd.f32 %v4285_v28, %v3855_v25  ;;  %v3400_v28 = vld [vmem:[#allocation10 + $0xb8] sm:$0xff] }
0x1886   :  { %v3146_v30 = vpop.f32.mrf.mxu1 }
0x1887   :  { %v3156_v31 = vadd.f32 %v3152_v29, %v2960_v11  ;;  %v3147_v32 = vadd.f32 %v3855_v25, %v3146_v30  ;;  %v3391_v11 = vld [vmem:[#allocation10 + $0x70] sm:$0xff]  ;;  %v3385_v25 = vld [vmem:[#allocation10 + $0x40] sm:$0xff]  ;;  %v3384_v29 = vld [vmem:[#allocation10 + $0x38] sm:$0xff] }
0x1888   :  { %v3399_v30 = vld [vmem:[#allocation10 + $0xb0] sm:$0xff] }
0x1889   :  { %v3155_v33 = vadd.f32 %v3147_v32, %v2959_v10  ;;  %v3164_v34 = vsel %vm154_vm0, %v3156_v31, 0.0  ;;  %v3170_v35 = vmul.f32 %v3156_v31, %v3156_v31  ;;  %v3407_v10 = vld [vmem:[#allocation10 + $0xf0] sm:$0xff]  ;;  %v3398_v32 = vld [vmem:[#allocation10 + $0xa8] sm:$0xff] }
0x188a   :  { %3165 = vadd.xlane.f32.xlu1 %v3164_v34  ;;  %4002 = vmatprep.subr.mxu1 %v3407_v10  ;;  %v3397_v34 = vld [vmem:[#allocation10 + $0xa0] sm:$0xff] }
0x188b   :  { %v3161_v36 = vsel %vm154_vm0, %v3155_v33, 0.0  ;;  %v3169_v37 = vmul.f32 %v3155_v33, %v3155_v33  ;;  %v3174_v38 = vsel %vm154_vm0, %v3170_v35, 0.0  ;;  %4003 = vmatpush3.msra.mxu1 %v3391_v11  ;;  %v3381_v35 = vld [vmem:[#allocation10 + $0x20] sm:$0xff] }
0x188c   :  { %3162 = vadd.xlane.f32.xlu0 %v3161_v36  ;;  %4004 = vmatprep.subr.mxu1 %v3406_v12 }
0x188d   :  { %v3171_v23 = vsel %vm154_vm0, %v3169_v37, 0.0  ;;  %4005 = vmatpush3.msra.mxu1 %v3390_v13 }
0x188e   :  { %3175 = vadd.xlane.f32.xlu1 %v3174_v38  ;;  %4006 = vmatprep.subr.mxu1 %v3405_v14  ;;  %v3396_v38 = vld [vmem:[#allocation10 + $0x98] sm:$0xff] }
0x188f   :  { %4007 = vmatpush3.msra.mxu1 %v3389_v16  ;;  %v3534_v16 = vld [vmem:[#allocation11 + $0x178] sm:$0xff] }
0x1890   :  { %3172 = vadd.xlane.f32.xlu0 %v3171_v23  ;;  %4008 = vmatprep.subr.mxu1 %v3404_v17  ;;  %v3380_v23 = vld [vmem:[#allocation10 + $0x18] sm:$0xff]  ;;  %v3531_v17 = vld [vmem:[#allocation11 + $0x160] sm:$0xff] }
0x1891   :  { %4009 = vmatpush3.msra.mxu1 %v3388_v19  ;;  %v3528_v19 = vld [vmem:[#allocation11 + $0x148] sm:$0xff] }
0x1892   :  { %4010 = vmatprep.subr.mxu1 %v3403_v20  ;;  %v3525_v20 = vld [vmem:[#allocation11 + $0x130] sm:$0xff] }
0x1893   :  { %4011 = vmatpush3.msra.mxu1 %v3387_v8  ;;  %v3522_v8 = vld [vmem:[#allocation11 + $0x118] sm:$0xff] }
0x1894   :  { %4012 = vmatprep.subr.mxu1 %v3402_v21  ;;  %v3519_v21 = vld [vmem:[#allocation11 + $0x100] sm:$0xff] }
0x1895   :  { %4013 = vmatpush3.msra.mxu1 %v3386_v22  ;;  %v3516_v22 = vld [vmem:[#allocation11 + $0xe8] sm:$0xff] }
0x1896   :  { %4014 = vmatprep.subr.mxu1 %v3401_v24  ;;  %v3513_v24 = vld [vmem:[#allocation11 + $0xd0] sm:$0xff] }
0x1897   :  { %4015 = vmatpush3.msra.mxu1 %v3385_v25  ;;  %v3510_v25 = vld [vmem:[#allocation11 + $0xb8] sm:$0xff] }
0x1898   :  { %4016 = vmatprep.subr.mxu1 %v3400_v28  ;;  %v3507_v28 = vld [vmem:[#allocation11 + $0xa0] sm:$0xff] }
0x1899   :  { %4017 = vmatpush3.msra.mxu1 %v3384_v29  ;;  %v3504_v29 = vld [vmem:[#allocation11 + $0x88] sm:$0xff] }
0x189a   :  { %4018 = vmatprep.subr.mxu1 %v3399_v30  ;;  %v3499_v30 = vld [vmem:[#allocation11 + $0x60] sm:$0xff] }
0x1913   :  { %v3166_v7 = vpop.xlane.xlu1 %3165 }
0x1914   :  { %v3168_v27 = vmul.f32 0.03125, %v3166_v7  ;;  %v3395_v7 = vld [vmem:[#allocation10 + $0x90] sm:$0xff] }
0x1915   :  { %v3163_v40 = vpop.xlane.xlu0 %3162 }
0x1916   :  { %v3167_v26 = vmul.f32 0.03125, %v3163_v40  ;;  %v3180_v4 = vmul.f32 %v3168_v27, %v3168_v27  ;;  %v3184_v47 = vsub.f32 %v3156_v31, %v3168_v27  ;;  %v3383_v31 = vld [vmem:[#allocation10 + $0x30] sm:$0xff]  ;;  %v3394_v40 = vld [vmem:[#allocation10 + $0x88] sm:$0xff] }
0x1917   :  { %v3176_v41 = vpop.xlane.xlu1 %3175  ;;  %4019 = vmatpush3.msra.mxu1 %v3383_v31  ;;  %v3379_v27 = vld [vmem:[#allocation10 + $0x10] sm:$0xff] }
0x1918   :  { %v3178_v3 = vmul.f32 0.03125, %v3176_v41  ;;  %v3179_v43 = vmul.f32 %v3167_v26, %v3167_v26  ;;  %v3183_v50 = vsub.f32 %v3155_v33, %v3167_v26  ;;  %v3382_v33 = vld [vmem:[#allocation10 + $0x28] sm:$0xff]  ;;  %4020 = vmatprep.subr.mxu1 %v3398_v32  ;;  %v3393_v41 = vld [vmem:[#allocation10 + $0x80] sm:$0xff]  ;;  %v3501_v31 = vld [vmem:[#allocation11 + $0x70] sm:$0xff] }
0x1919   :  { %v3173_v42 = vpop.xlane.xlu0 %3172  ;;  %4021 = vmatpush3.msra.mxu1 %v3382_v33  ;;  %v3378_v26 = vld [vmem:[#allocation10 + $0x8] sm:$0xff]  ;;  %v3497_v32 = vld [vmem:[#allocation11 + $0x50] sm:$0xff] }
0x191a   :  { %v3182_v5 = vsub.f32 %v3178_v3, %v3180_v4  ;;  %v3177_v2 = vmul.f32 0.03125, %v3173_v42  ;;  %4022 = vmatprep.subr.mxu1 %v3397_v34  ;;  %v3377_v4 = vld [vmem:[#allocation10] sm:$0xff]  ;;  %v3533_v3 = vld [vmem:[#allocation11 + $0x170] sm:$0xff]  ;;  %v3532_v42 = vld [vmem:[#allocation11 + $0x168] sm:$0xff] }
0x191b   :  { %4023 = vmatpush3.msra.mxu1 %v3381_v35  ;;  %v3496_v33 = vld [vmem:[#allocation11 + $0x48] sm:$0xff]  ;;  %v3498_v34 = vld [vmem:[#allocation11 + $0x58] sm:$0xff] }
0x191c   :  { %v3186_v44 = vadd.f32 1e-06, %v3182_v5  ;;  %v3181_v45 = vsub.f32 %v3177_v2, %v3179_v43  ;;  %4024 = vmatprep.subr.mxu1 %v3396_v38  ;;  %v3530_v43 = vld [vmem:[#allocation11 + $0x158] sm:$0xff]  ;;  %v3529_v5 = vld [vmem:[#allocation11 + $0x150] sm:$0xff]  ;;  %v3527_v2 = vld [vmem:[#allocation11 + $0x140] sm:$0xff] }
0x191d   :  { %4025 = vmatpush3.msra.mxu1 %v3380_v23  ;;  %v3494_v35 = vld [vmem:[#allocation11 + $0x38] sm:$0xff]  ;;  %v3491_v38 = vld [vmem:[#allocation11 + $0x20] sm:$0xff] }
0x191e   :  { %4432 = vrsqrt.f32 %v3186_v44  ;;  %v3185_v46 = vadd.f32 1e-06, %v3181_v45  ;;  %4026 = vmatprep.subr.mxu1 %v3395_v7  ;;  %v3526_v44 = vld [vmem:[#allocation11 + $0x138] sm:$0xff]  ;;  %v3524_v45 = vld [vmem:[#allocation11 + $0x128] sm:$0xff] }
0x191f   :  { %4027 = vmatpush3.msra.mxu1 %v3379_v27  ;;  %v3490_v23 = vld [vmem:[#allocation11 + $0x18] sm:$0xff]  ;;  %v3492_v7 = vld [vmem:[#allocation11 + $0x28] sm:$0xff] }
0x1920   :  { %4434 = vrsqrt.f32 %v3185_v46  ;;  %4028 = vmatprep.subr.mxu1 %v3394_v40  ;;  %v3523_v46 = vld [vmem:[#allocation11 + $0x120] sm:$0xff]  ;;  %v3488_v27 = vld [vmem:[#allocation11 + $0x8] sm:$0xff] }
0x1921   :  { %4029 = vmatpush3.msra.mxu1 %v3378_v26  ;;  %v3487_v40 = vld [vmem:[#allocation11] sm:$0xff]  ;;  %v3489_v26 = vld [vmem:[#allocation11 + $0x10] sm:$0xff] }
0x1922   :  { %4030 = vmatprep.subr.mxu1 %v3393_v41 }
0x1923   :  { %4031 = vmatpush3.msra.mxu1 %v3377_v4  ;;  %v3864_v4 = vld [vmem:[%s5281_s16] ss:$0 sm:$0xff] }
0x1924   :  { %4293 = vmatprep.subr.mxu1 %v4633_v39 }
0x192b   :  { %v4433_v48 = vpop.eup %4432 }
0x192c   :  { %v3190_v15 = vmul.f32 %v4433_v48, %v3184_v47  ;;  %v3521_v47 = vld [vmem:[#allocation11 + $0x110] sm:$0xff]  ;;  %v3520_v48 = vld [vmem:[#allocation11 + $0x108] sm:$0xff] }
0x192d   :  { %v4435_v18 = vpop.eup %4434 }
0x192e   :  { %v3198_v52 = vmul.f32 %v3860_v49, %v3190_v15  ;;  %v3189_v53 = vmul.f32 %v4435_v18, %v3183_v50  ;;  %v3517_v50 = vld [vmem:[#allocation11 + $0xf0] sm:$0xff]  ;;  %v3515_v15 = vld [vmem:[#allocation11 + $0xe0] sm:$0xff]  ;;  %v3514_v18 = vld [vmem:[#allocation11 + $0xd8] sm:$0xff] }
0x1930   :  { %v3206_v54 = vadd.f32 %v3861_v51, %v3198_v52  ;;  %v3197_v55 = vmul.f32 %v3860_v49, %v3189_v53  ;;  %v3518_v49 = vld [vmem:[#allocation11 + $0xf8] sm:$0xff]  ;;  %v3511_v52 = vld [vmem:[#allocation11 + $0xc0] sm:$0xff]  ;;  %v3509_v53 = vld [vmem:[#allocation11 + $0xb0] sm:$0xff] }
0x1932   :  { %4287 = vmatpush3.msra.mxu0 %v3206_v54  ;;  %v3205_v56 = vadd.f32 %v3861_v51, %v3197_v55  ;;  %v3512_v51 = vld [vmem:[#allocation11 + $0xc8] sm:$0xff]  ;;  %v3506_v55 = vld [vmem:[#allocation11 + $0x98] sm:$0xff] }
0x1933   :  { %4288 = vmatprep.subr.mxu0 %v4633_v39  ;;  %v3508_v54 = vld [vmem:[#allocation11 + $0xa8] sm:$0xff] }
0x1934   :  { %4289 = vmatpush3.msra.mxu0 %v3205_v56  ;;  %v3505_v56 = vld [vmem:[#allocation11 + $0x90] sm:$0xff] }
0x1935   :  { %4291 = vmatmul.mubr.msk.f32.vlgmr.msra.gmra.mxu0 %vm334_vm2, %v3207_v57  ;;  %3328 = vmatprep.subr.mxu0 %v3288_v58  ;;  %v3503_v57 = vld [vmem:[#allocation11 + $0x80] sm:$0xff]  ;;  %v3502_v58 = vld [vmem:[#allocation11 + $0x78] sm:$0xff] }
0x1936   :  { %3329 = vmatpush1.msra.mxu0 %v3287_v59  ;;  %3368 = vmatprep.mubr.f32.mxu0 %v4633_v39  ;;  %v3500_v59 = vld [vmem:[#allocation11 + $0x68] sm:$0xff] }
0x1937   :  { %3330 = vmatprep.subr.mxu0 %v3286_v60  ;;  %v3291_v60 = vlaneseq }
0x1938   :  { %3331 = vmatpush1.msra.mxu0 %v3285_v61 }
0x1939   :  { %3332 = vmatprep.subr.mxu0 %v3284_v6  ;;  %v5219_v61 = vshrl.u32 %v3291_v60, 7 }
0x193a   :  { %3333 = vmatpush1.msra.mxu0 %v3283_v62  ;;  %v3289_v62 = vld [vmem:[%s5279_s14] sm:$0x3] }
0x193b   :  { %3334 = vmatprep.subr.mxu0 %v3282_v63  ;;  %v3293_v6 = vsub.s32 0, %v5219_v61  ;;  %v3297_v63 = vsub.s32 1, %v5219_v61 }
0x193c   :  { %3335 = vmatpush1.msra.mxu0 %v3281_v0 }
0x193d   :  { %3552 = vmatprep.subr.mxu0 %v3533_v3  ;;  %v3294_v0 = vrot.slane %v3289_v62, %v3293_v6  ;;  %v3298_v1 = vrot.slane %v3289_v62, %v3297_v63 }
0x19f5   :  { %v3277_v36 = vpop.f32.mrf.mxu0 }
0x19f6   :  { %3863 = vmatmul.mubr.msk.f32.vlgmr.msra.gmra.mxu0 %vm154_vm0, %v3277_v36  ;;  %3715 = vst.msk [vmem:[#allocation14] sm:$0x3] %vm3714_vm5, %v3277_v36  ;;  %v3493_v36 = vld [vmem:[#allocation11 + $0x30] sm:$0xff] }
0x19f7   :  { %v4292_v37 = vpop.f32.mrf.mxu0  ;;  %3616 = vmatprep.mubr.f32.mxu0 %v4633_v39  ;;  %3553 = vmatpush1.msra.mxu0 %v3532_v42 }
0x19f8   :  { %3554 = vmatprep.subr.mxu0 %v3530_v43  ;;  %v3495_v37 = vld [vmem:[#allocation11 + $0x40] sm:$0xff] }
0x19f9   :  { %3555 = vmatpush1.msra.mxu0 %v3529_v5 }
0x19fa   :  { %3556 = vmatprep.subr.mxu0 %v3527_v2 }
0x19fb   :  { %3557 = vmatpush1.msra.mxu0 %v3526_v44 }
0x19fc   :  { %3558 = vmatprep.subr.mxu0 %v3524_v45 }
0x19fd   :  { %3559 = vmatpush1.msra.mxu0 %v3523_v46 }
0x19fe   :  { %3560 = vmatprep.subr.mxu0 %v3521_v47 }
0x19ff   :  { %3561 = vmatpush1.msra.mxu0 %v3520_v48 }
0x1a00   :  { %3562 = vmatprep.subr.mxu0 %v3518_v49 }
0x1a01   :  { %3563 = vmatpush1.msra.mxu0 %v3517_v50 }
0x1a02   :  { %3564 = vmatprep.subr.mxu0 %v3515_v15 }
0x1a03   :  { %3565 = vmatpush1.msra.mxu0 %v3514_v18 }
0x1a04   :  { %3566 = vmatprep.subr.mxu0 %v3512_v51 }
0x1a05   :  { %3567 = vmatpush1.msra.mxu0 %v3511_v52 }
0x1a06   :  { %3568 = vmatprep.subr.mxu0 %v3509_v53 }
0x1a07   :  { %3569 = vmatpush1.msra.mxu0 %v3508_v54 }
0x1a08   :  { %3570 = vmatprep.subr.mxu0 %v3506_v55 }
0x1a09   :  { %3571 = vmatpush1.msra.mxu0 %v3505_v56 }
0x1a0a   :  { %3572 = vmatprep.subr.mxu0 %v3503_v57 }
0x1a0b   :  { %3573 = vmatpush1.msra.mxu0 %v3502_v58 }
0x1a0c   :  { %3574 = vmatprep.subr.mxu0 %v3500_v59 }
0x1a0d   :  { %3575 = vmatpush1.msra.mxu0 %v3499_v30 }
0x1a0e   :  { %3576 = vmatprep.subr.mxu0 %v3497_v32 }
0x1a0f   :  { %3577 = vmatpush1.msra.mxu0 %v3496_v33 }
0x1a10   :  { %3578 = vmatprep.subr.mxu0 %v3494_v35 }
0x1a11   :  { %3579 = vmatpush1.msra.mxu0 %v3493_v36 }
0x1a12   :  { %3580 = vmatprep.subr.mxu0 %v3491_v38 }
0x1a13   :  { %3581 = vmatpush1.msra.mxu0 %v3490_v23 }
0x1a14   :  { %3582 = vmatprep.subr.mxu0 %v3488_v27 }
0x1a15   :  { %3583 = vmatpush1.msra.mxu0 %v3487_v40 }
0x1ab6   :  { %v3370_v9 = vpop.f32.mrf.mxu0 }
0x1ab7   :  { %v3371_v10 = vadd.f32 %v3370_v9, %v3294_v0 }
0x1ab8   :  { %v3372_v11 = vpop.f32.mrf.mxu0 }
0x1ab9   :  { %v3373_v12 = vadd.f32 %v3372_v11, %v3298_v1  ;;  %v3375_v14 = vmax.f32 %v3371_v10, 0.0 }
0x1abb   :  { %v3376_v13 = vmax.f32 %v3373_v12, 0.0 }
0x1abd   :  { %3480 = vmatprep.mubr.f32.mxu1 %v3376_v13 }
0x1abe   :  { %3481 = vmatmul.mubr.f32.vlgmr.msra.gmra.mxu1 %v3375_v14 }
0x1abf   :  { %4294 = vmatpush3.msra.mxu1 %v3534_v16  ;;  %4325 = vmatprep.mubr.msk.f32.mxu1 %vm4634_vm4, %v4633_v39 }
0x1ac0   :  { %4295 = vmatprep.subr.mxu1 %v4633_v39 }
0x1ac1   :  { %4296 = vmatpush3.msra.mxu1 %v3531_v17 }
0x1ac2   :  { %4297 = vmatprep.subr.mxu1 %v4633_v39 }
0x1ac3   :  { %4298 = vmatpush3.msra.mxu1 %v3528_v19 }
0x1ac4   :  { %4299 = vmatprep.subr.mxu1 %v4633_v39 }
0x1ac5   :  { %4300 = vmatpush3.msra.mxu1 %v3525_v20 }
0x1ac6   :  { %4301 = vmatprep.subr.mxu1 %v4633_v39 }
0x1ac7   :  { %4302 = vmatpush3.msra.mxu1 %v3522_v8 }
0x1ac8   :  { %4303 = vmatprep.subr.mxu1 %v4633_v39 }
0x1ac9   :  { %4304 = vmatpush3.msra.mxu1 %v3519_v21 }
0x1aca   :  { %4305 = vmatprep.subr.mxu1 %v4633_v39 }
0x1acb   :  { %4306 = vmatpush3.msra.mxu1 %v3516_v22 }
0x1acc   :  { %4307 = vmatprep.subr.mxu1 %v4633_v39 }
0x1acd   :  { %4308 = vmatpush3.msra.mxu1 %v3513_v24 }
0x1ace   :  { %4309 = vmatprep.subr.mxu1 %v4633_v39 }
0x1acf   :  { %4310 = vmatpush3.msra.mxu1 %v3510_v25 }
0x1ad0   :  { %4311 = vmatprep.subr.mxu1 %v4633_v39 }
0x1ad1   :  { %4312 = vmatpush3.msra.mxu1 %v3507_v28 }
0x1ad2   :  { %4313 = vmatprep.subr.mxu1 %v4633_v39 }
0x1ad3   :  { %4314 = vmatpush3.msra.mxu1 %v3504_v29 }
0x1ad4   :  { %4315 = vmatprep.subr.mxu1 %v4633_v39 }
0x1ad5   :  { %4316 = vmatpush3.msra.mxu1 %v3501_v31 }
0x1ad6   :  { %4317 = vmatprep.subr.mxu1 %v4633_v39 }
0x1ad7   :  { %4318 = vmatpush3.msra.mxu1 %v3498_v34 }
0x1ad8   :  { %4319 = vmatprep.subr.mxu1 %v4633_v39 }
0x1ad9   :  { %4320 = vmatpush3.msra.mxu1 %v3495_v37 }
0x1ada   :  { %4321 = vmatprep.subr.mxu1 %v4633_v39 }
0x1adb   :  { %4322 = vmatpush3.msra.mxu1 %v3492_v7 }
0x1adc   :  { %4323 = vmatprep.subr.mxu1 %v4633_v39 }
0x1add   :  { %4324 = vmatpush3.msra.mxu1 %v3489_v26 }
0x1b7e   :  { %v4032_v41 = vpop.f32.mrf.mxu1 }
0x1b80   :  { %v4033_v3 = vpop.f32.mrf.mxu1 }
0x1b81   :  { %v4034_v42 = vadd.f32 %v4033_v3, %v4032_v41 }
0x1b83   :  { %v3483_v43 = vadd.f32 %v4034_v42, %v3864_v4 }
0x1b85   :  { %v3486_v5 = vmax.f32 %v3483_v43, 0.0 }
0x1b87   :  { %3617 = vmatmul.mubr.f32.vlgmr.msra.gmra.mxu0 %v3486_v5  ;;  %4326 = vmatmul.mubr.f32.vlgmr.msra.gmra.mxu1 %v3486_v5 }
0x1b88   :  { %4569 = shalt.err (!%p4566_p6)
}
0x1b89   :  { %3735 = dma.vmem_to_hbm [thread:$0]  %s3733_s22, 32, %s5285_s20, [#allocation15]   ;;  %v3547_v39 = vsub.s32 2, %v5219_v61  ;;  %v4636_v2 = vmov 1983009808  }
0x1b8a   :  { %v3698_v44 = vunpack.c.l.s4 %v4636_v2  ;;  %v3535_v45 = vld [vmem:[%s5283_s18] sm:$0x7]  ;;  %s4637_s20 = smov [#allocation13]  }
0x1b8b   :  { %v3540_v46 = vrot.slane %v3535_v45, %v3293_v6  ;;  %v3548_v47 = vrot.slane %v3535_v45, %v3547_v39  ;;  %v3544_v49 = vrot.slane %v3535_v45, %v3297_v63  ;;  %s3722_s18 = sshll.u32 %s4637_s20, 4  ;;  %s3723_s18 = int_to_ptr.vmem [resolvable:$true] %s3722_s18 }
0x1b8c   :  { %v3699_v48 = vunpack.c.0.s8 %v3698_v44  ;;  %s4578_s28 = scalar_lea.vmem %s3723_s18, 96  ;;  %p4583_p8 = scmp.lt.s32.totalorder %s3723_s18, %s3723_s18 }
0x1b8d   :  { %p4579_p7 = scmp.ne.s32.totalorder %s3723_s18, %s4578_s28  ;;  %p4584_p9 = scmp.lt.s32.totalorder %s4578_s28, %s4578_s28 }
0x1b8e   :  { %v3702_v54 = vsub.s32 %v3699_v48, %v5219_v61 }
0x1b8f   :  { %p4585_p10 = por %p4584_p9, %p4583_p8 }
0x1b91   :  { %p4586_p11 = pnand %p4585_p10, %p4579_p7 }
0x1c47   :  { %v3618_v50 = vpop.f32.mrf.mxu0  ;;  %v3689_v15 = vpop.f32.mrf.mxu1 }
0x1c48   :  { %v3619_v52 = vadd.f32 %v3618_v50, %v3540_v46  ;;  %v3690_v53 = vadd.f32 %v3689_v15, %v3548_v47 }
0x1c49   :  { %v3620_v18 = vpop.f32.mrf.mxu0  ;;  %v4327_v51 = vpop.f32.mrf.mxu1 }
0x1c4a   :  { %v3621_v55 = vadd.f32 %v3620_v18, %v3544_v49  ;;  %v3710_v57 = vrot.slane %v3690_v53, %v3702_v54 }
0x1c4c   :  { %v3696_v56 = vcombine.low %v3619_v52, %v3621_v55 }
0x1c4e   :  { %v3703_v58 = vrot.slane %v3696_v56, %v3702_v54 }
0x1c50   :  { %v3711_v59 = vcombine.low %v3703_v58, %v3710_v57 }
0x1c52   :  { %3713 = vst [vmem:[#allocation13] sm:$0x3f] %v3711_v59 }
0x1c53   :  { %4589 = shalt.err (!%p4586_p11)
}
0x1c54   :  { %s5305_s30 = sld [smem:[#allocation27_spill]] }
0x1c5a   :  { %3725 = dma.vmem_to_hbm [thread:$0]  %s3723_s18, 96, %s5305_s30, [#allocation4]  }
0x1c5b   :  { %4606 = dma.done.wait [#allocation4], 96  }
0x1c5c   :  { %4607 = vsyncadd [#allocation4], 4294967200 }
0x1c5d   :  { %4608 = dma.done.wait [#allocation15], 32  }
0x1c5e   :  { %4609 = vsyncadd [#allocation15], 4294967264 }
0x1c5f   :  { %3742 = vsyncpa [#allocation3], 1 }
0x1c60   :  { %3743 = vsyncpa [#allocation6], 1 }
0x1c61   :  { %3744 = vsyncpa [#allocation9], 1 }
0x1c62   :  { %3745 = vsyncpa [#allocation12], 1 }
0x1c63   :  { %3746 = vsyncpa [#allocation4], 1 }
0x1c64   :  { %3747 = vsyncpa [#allocation15], 1 }

</bundles_post_ra>
